<compile_context>
chip_gen: v7x
topology: tpu7x:2x2x1
jax: 0.10.0
libtpu: 0.0.40
codegen_flags: <defaults>
</compile_context>

<pallas_src>
import jax
import jax.numpy as jnp
from jax.experimental import pallas as pl
from jax.experimental.pallas import tpu as pltpu


def _cdiv(a, b):
    return -(-a // b)


def _round_up(n, m):
    return _cdiv(n, m) * m


def _attention_kernel(x_ref,
                      wki_ref, bki_ref,
                      wv_ref, bv_ref,
                      wo_ref, bo_ref,
                      o_ref):
    # x_ref block: (TB, N, Dp); weights are pre-transposed (in, out), padded so
    # Dp is a multiple of 128.  wki is [wk | wi*ones(128)] of shape (Dp, Dp+128).
    TB, N, Dp = x_ref.shape

    # MXU operands in the weights' dtype (x.dtype by default, bf16 if requested);
    # accumulation is always f32 via preferred_element_type.
    x2 = x_ref[...].reshape(TB * N, Dp).astype(wki_ref.dtype)

    # Fused fc_k | fc_i: one (TB*N, Dp) @ (Dp, Dp+128) MXU pass.  The trailing
    # 128 columns are fc_i replicated across a full lane slab so the softmax
    # below runs on dense vregs; both slices are lane-tile aligned.
    ki = jnp.dot(x2, wki_ref[...], preferred_element_type=jnp.float32) + bki_ref[...]
    k = ki[:, :Dp].reshape(TB, N, Dp)        # fc_k(x)   (f32)
    i = ki[:, Dp:].reshape(TB, N, 128)       # fc_i(x) broadcast over 128 lanes

    # Softmax over the sequence axis N, per batch element (f32, lane-dense).
    m = jnp.max(i, axis=1, keepdims=True)
    e = jnp.exp(i - m)
    w_full = e * pl.reciprocal(jnp.sum(e, axis=1, keepdims=True), approx=True)
    w = w_full[:, :, 0:1]                    # all 128 lanes identical -> lane 0

    # Context vector via MXU contraction over N: (TB,N,1) x (TB,N,Dp) -> (TB,1,Dp).
    ctx = jnp.einsum("bnq,bnd->bqd", w, k, preferred_element_type=jnp.float32)

    # fc_v, modulate by the context vector, then fc_o.
    v = jnp.dot(x2, wv_ref[...], preferred_element_type=jnp.float32) + bv_ref[...]
    v = (v.reshape(TB, N, Dp) * ctx).reshape(TB * N, Dp)
    out = jnp.dot(v.astype(wo_ref.dtype), wo_ref[...],
                  preferred_element_type=jnp.float32) + bo_ref[...]

    o_ref[...] = out.reshape(TB, N, Dp).astype(o_ref.dtype)


def _usable_vmem_bytes():
    """Generation-aware VMEM budget (leave headroom for compiler scratch)."""
    cap = 64 << 20  # conservative default = v7x per-core VMEM
    try:
        cap = int(pltpu.get_tpu_info().vmem_capacity_bytes)
    except Exception:
        pass
    return max(int(cap * 0.8), 32 << 20)


def _choose_tiling(B, N, Dp, x_itemsize, w_itemsize, usable_bytes):
    """Pick (TB, grid_steps) so weights + blocks + f32 temps fit usable VMEM."""
    # Single-buffered weights/biases, resident for the whole kernel.
    weight_bytes = (Dp * (Dp + 128) + 2 * Dp * Dp) * w_itemsize + (3 * Dp + 128) * 4
    # Per-batch-row per-step cost: double-buffered x/out blocks (kernel dtype)
    # plus ~6 live f32 slabs (ki, k, v, v*ctx, out, cast) and the 128-lane
    # i / exp / softmax intermediates.
    per_row = N * (Dp * (4 * x_itemsize + 6 * 4) + 4 * 128 * 4)
    budget = max(usable_bytes - weight_bytes, per_row)
    tb_cap = max(1, budget // per_row)
    tb_mxu = _cdiv(256, N)                 # fill >= 256 MXU rows per grid step
    steps = max(2, _cdiv(B, tb_cap))       # >= 2 parallel steps: both v7x TCs
    tb = _cdiv(B, steps)                   # balanced tile within the VMEM cap
    tb = min(max(tb, min(tb_mxu, tb_cap)), tb_cap)
    steps = max(2, _cdiv(B, tb))
    return tb, steps


def mobilevitv2_attention(x, params, matmul_dtype=None):
    """x: (B, N, D). params: dict of transposed (in, out) weights / biases.

    matmul_dtype: optional dtype (e.g. jnp.bfloat16) for the MXU operands when
    x is float32; accumulation stays f32.  None = use x.dtype (exact parity
    with the f32 reference).
    """
    B, N, D = x.shape
    Dp = _round_up(D, 128)     # lane-dense feature width
    w_dtype = jnp.dtype(matmul_dtype) if matmul_dtype is not None else x.dtype

    usable = _usable_vmem_bytes()
    TB, steps = _choose_tiling(B, N, Dp, jnp.dtype(x.dtype).itemsize,
                               jnp.dtype(w_dtype).itemsize, usable)
    Bp = TB * steps

    # Pad activations: lane-dense feature width, and batch rows so the MXU M
    # dim is filled and the grid has >= 2 steps.  Padded entries are zeros.
    if (Bp, Dp) != (B, D):
        x = jnp.pad(x, ((0, Bp - B), (0, 0), (0, Dp - D)))

    pad_w = lambda w: jnp.pad(w, ((0, Dp - D), (0, Dp - D)))
    pad_b = lambda b: jnp.pad(b, ((0, 0), (0, Dp - D)))

    wk_p = pad_w(params["wk_t"])
    bk_p = pad_b(params["bk"])
    wv_p = pad_w(params["wv_t"]).astype(w_dtype)
    bv_p = pad_b(params["bv"]).astype(jnp.float32)
    wo_p = pad_w(params["wo_t"]).astype(w_dtype)
    bo_p = pad_b(params["bo"]).astype(jnp.float32)

    # Fused [wk | wi] weight; fc_i's single column is replicated across a full
    # 128-lane slab so the in-kernel softmax runs on dense vregs.
    wi_rep = jnp.pad(jnp.tile(params["wi_t"], (1, 128)), ((0, Dp - D), (0, 0)))
    bi_rep = jnp.tile(params["bi"], (1, 128))
    wki = jnp.concatenate([wk_p, wi_rep], axis=1).astype(w_dtype)       # (Dp, Dp+128)
    bki = jnp.concatenate([bk_p, bi_rep], axis=1).astype(jnp.float32)   # (1, Dp+128)

    # Constant operands: single VMEM buffer (index map never changes, so the
    # default double-buffering would only waste VMEM).
    const_spec = lambda a: pl.BlockSpec(a.shape, lambda b: (0,) * a.ndim,
                                        pipeline_mode=pl.Buffered(1))

    out_p = pl.pallas_call(
        _attention_kernel,
        out_shape=jax.ShapeDtypeStruct((Bp, N, Dp), x.dtype),
        grid_spec=pltpu.PrefetchScalarGridSpec(
            num_scalar_prefetch=0,
            grid=(steps,),
            in_specs=[
                pl.BlockSpec((TB, N, Dp), lambda b: (b, 0, 0)),   # x (double-buffered)
                const_spec(wki), const_spec(bki),
                const_spec(wv_p), const_spec(bv_p),
                const_spec(wo_p), const_spec(bo_p),
            ],
            out_specs=pl.BlockSpec((TB, N, Dp), lambda b: (b, 0, 0)),
        ),
        compiler_params=pltpu.CompilerParams(
            dimension_semantics=("parallel",),
            vmem_limit_bytes=int(usable)),
    )(x, wki, bki, wv_p, bv_p, wo_p, bo_p)

    if (Bp, Dp) != (B, D):
        out_p = out_p[:B, :, :D]
    return out_p


def init_params(key, d_model):
    """Deterministic init matching the module: weights ~ N(0, 0.001), bias = 0."""
    k_i, k_k, k_v, k_o = jax.random.split(key, 4)
    std = 0.001
    # nn.Linear stores W as (out, in); we keep the transposed (in, out) form.
    return {
        "wi_t": (jax.random.normal(k_i, (1, d_model)) * std).T,        # (D, 1)
        "bi":   jnp.zeros((1, 1), jnp.float32),
        "wk_t": (jax.random.normal(k_k, (d_model, d_model)) * std).T,  # (D, D)
        "bk":   jnp.zeros((1, d_model), jnp.float32),
        "wv_t": (jax.random.normal(k_v, (d_model, d_model)) * std).T,
        "bv":   jnp.zeros((1, d_model), jnp.float32),
        "wo_t": (jax.random.normal(k_o, (d_model, d_model)) * std).T,
        "bo":   jnp.zeros((1, d_model), jnp.float32),
    }


def reference(x, params):
    """Pure-JAX reference mirroring the PyTorch forward."""
    i = x @ params["wi_t"] + params["bi"]                 # (B, N, 1)
    w = jax.nn.softmax(i, axis=1)
    k = x @ params["wk_t"] + params["bk"]                 # (B, N, D)
    ctx = jnp.sum(w * k, axis=1, keepdims=True)           # (B, 1, D)
    v = (x @ params["wv_t"] + params["bv"]) * ctx
    return v @ params["wo_t"] + params["bo"]


if __name__ == "__main__":
    key = jax.random.PRNGKey(0)
    k_x, k_p = jax.random.split(key)

    B, N, D = 2, 8, 32   # batch, sequence length, d_model
    x = jax.random.normal(k_x, (B, N, D), dtype=jnp.float32)
    params = init_params(k_p, D)

    out = jax.block_until_ready(mobilevitv2_attention(x, params))

    ref = reference(x, params)
    assert out.shape == (B, N, D)
    assert jnp.allclose(out, ref, atol=1e-5, rtol=1e-4), "mismatch vs reference"

    print("KERNEL_OK")
</pallas_src>

<mosaic_0001>
module attributes {stable_mosaic.version = 11 : i64} {
  func.func @_attention_kernel(%arg0: i32, %arg1: memref<32x8x128xf32, #tpu.memory_space<vmem>>, %arg2: memref<128x256xf32, #tpu.memory_space<vmem>>, %arg3: memref<1x256xf32, #tpu.memory_space<vmem>>, %arg4: memref<128x128xf32, #tpu.memory_space<vmem>>, %arg5: memref<1x128xf32, #tpu.memory_space<vmem>>, %arg6: memref<128x128xf32, #tpu.memory_space<vmem>>, %arg7: memref<1x128xf32, #tpu.memory_space<vmem>>, %arg8: memref<32x8x128xf32, #tpu.memory_space<vmem>>) attributes {dimension_semantics = [#tpu.dimension_semantics<parallel>], iteration_bounds = array<i64: 2>, scalar_prefetch = 0 : i64, scratch_operands = 0 : i64, tpu.core_type = #tpu.core_type<tc>, window_params = [{transform_indices = @transform_0, window_bounds = array<i64: 32, 8, 128>}, {pipeline_mode = #tpu.pipeline_mode<synchronous>, transform_indices = @transform_1, window_bounds = array<i64: 128, 256>}, {pipeline_mode = #tpu.pipeline_mode<synchronous>, transform_indices = @transform_2, window_bounds = array<i64: 1, 256>}, {pipeline_mode = #tpu.pipeline_mode<synchronous>, transform_indices = @transform_3, window_bounds = array<i64: 128, 128>}, {pipeline_mode = #tpu.pipeline_mode<synchronous>, transform_indices = @transform_4, window_bounds = array<i64: 1, 128>}, {pipeline_mode = #tpu.pipeline_mode<synchronous>, transform_indices = @transform_5, window_bounds = array<i64: 128, 128>}, {pipeline_mode = #tpu.pipeline_mode<synchronous>, transform_indices = @transform_6, window_bounds = array<i64: 1, 128>}, {transform_indices = @transform_7, window_bounds = array<i64: 32, 8, 128>}]} {
    %c0 = arith.constant 0 : index
    %c0_0 = arith.constant 0 : index
    %c0_1 = arith.constant 0 : index
    %0 = vector.load %arg1[%c0, %c0_0, %c0_1] : memref<32x8x128xf32, #tpu.memory_space<vmem>>, vector<32x8x128xf32>
    %1 = vector.shape_cast %0 : vector<32x8x128xf32> to vector<256x128xf32>
    %c0_2 = arith.constant 0 : index
    %c0_3 = arith.constant 0 : index
    %2 = vector.load %arg2[%c0_2, %c0_3] : memref<128x256xf32, #tpu.memory_space<vmem>>, vector<128x256xf32>
    %cst = arith.constant dense<0.000000e+00> : vector<256x256xf32>
    %3 = tpu.matmul %1, %2, %cst {dimension_numbers = #tpu.dot_dimension_numbers<[1], [0], [0], [1], [0, 0, 1, 1], [], []>} : vector<256x128xf32>, vector<128x256xf32>, vector<256x256xf32> -> vector<256x256xf32>
    %c0_4 = arith.constant 0 : index
    %c0_5 = arith.constant 0 : index
    %4 = vector.load %arg3[%c0_4, %c0_5] : memref<1x256xf32, #tpu.memory_space<vmem>>, vector<1x256xf32>
    %5 = vector.broadcast %4 : vector<1x256xf32> to vector<256x256xf32>
    %6 = arith.addf %3, %5 : vector<256x256xf32>
    %7 = vector.extract_strided_slice %6 {offsets = [0, 0], sizes = [256, 128], strides = [1, 1]} : vector<256x256xf32> to vector<256x128xf32>
    %8 = vector.shape_cast %7 : vector<256x128xf32> to vector<32x8x128xf32>
    %9 = vector.extract_strided_slice %6 {offsets = [0, 128], sizes = [256, 128], strides = [1, 1]} : vector<256x256xf32> to vector<256x128xf32>
    %10 = vector.shape_cast %9 : vector<256x128xf32> to vector<32x8x128xf32>
    %cst_6 = arith.constant dense<0xFF800000> : vector<32x128xf32>
    %11 = vector.multi_reduction <maximumf>, %10, %cst_6 [1] : vector<32x8x128xf32> to vector<32x128xf32>
    %12 = vector.shape_cast %11 : vector<32x128xf32> to vector<32x1x128xf32>
    %13 = vector.broadcast %12 : vector<32x1x128xf32> to vector<32x8x128xf32>
    %14 = arith.subf %10, %13 : vector<32x8x128xf32>
    %15 = math.exp %14 : vector<32x8x128xf32>
    %cst_7 = arith.constant dense<0.000000e+00> : vector<32x128xf32>
    %16 = vector.multi_reduction <add>, %15, %cst_7 [1] : vector<32x8x128xf32> to vector<32x128xf32>
    %17 = vector.shape_cast %16 : vector<32x128xf32> to vector<32x1x128xf32>
    %18 = tpu.reciprocal %17 {approx = true} : vector<32x1x128xf32> -> vector<32x1x128xf32>
    %19 = vector.broadcast %18 : vector<32x1x128xf32> to vector<32x8x128xf32>
    %20 = arith.mulf %15, %19 : vector<32x8x128xf32>
    %21 = vector.extract_strided_slice %20 {offsets = [0, 0, 0], sizes = [32, 8, 1], strides = [1, 1, 1]} : vector<32x8x128xf32> to vector<32x8x1xf32>
    "tpu.trace_start"() <{level = 10 : i32, message = "bnq,bnd->bqd"}> : () -> ()
    %cst_8 = arith.constant dense<0.000000e+00> : vector<32x1x128xf32>
    %22 = tpu.matmul %21, %8, %cst_8 {dimension_numbers = #tpu.dot_dimension_numbers<[1], [1], [2], [2], [0, 0, 0, 2, 1, 2], [0], [0]>} : vector<32x8x1xf32>, vector<32x8x128xf32>, vector<32x1x128xf32> -> vector<32x1x128xf32>
    "tpu.trace_stop"() : () -> ()
    %c0_9 = arith.constant 0 : index
    %c0_10 = arith.constant 0 : index
    %23 = vector.load %arg4[%c0_9, %c0_10] : memref<128x128xf32, #tpu.memory_space<vmem>>, vector<128x128xf32>
    %cst_11 = arith.constant dense<0.000000e+00> : vector<256x128xf32>
    %24 = tpu.matmul %1, %23, %cst_11 {dimension_numbers = #tpu.dot_dimension_numbers<[1], [0], [0], [1], [0, 0, 1, 1], [], []>} : vector<256x128xf32>, vector<128x128xf32>, vector<256x128xf32> -> vector<256x128xf32>
    %c0_12 = arith.constant 0 : index
    %c0_13 = arith.constant 0 : index
    %25 = vector.load %arg5[%c0_12, %c0_13] : memref<1x128xf32, #tpu.memory_space<vmem>>, vector<1x128xf32>
    %26 = vector.broadcast %25 : vector<1x128xf32> to vector<256x128xf32>
    %27 = arith.addf %24, %26 : vector<256x128xf32>
    %28 = vector.shape_cast %27 : vector<256x128xf32> to vector<32x8x128xf32>
    %29 = vector.broadcast %22 : vector<32x1x128xf32> to vector<32x8x128xf32>
    %30 = arith.mulf %28, %29 : vector<32x8x128xf32>
    %31 = vector.shape_cast %30 : vector<32x8x128xf32> to vector<256x128xf32>
    %c0_14 = arith.constant 0 : index
    %c0_15 = arith.constant 0 : index
    %32 = vector.load %arg6[%c0_14, %c0_15] : memref<128x128xf32, #tpu.memory_space<vmem>>, vector<128x128xf32>
    %cst_16 = arith.constant dense<0.000000e+00> : vector<256x128xf32>
    %33 = tpu.matmul %31, %32, %cst_16 {dimension_numbers = #tpu.dot_dimension_numbers<[1], [0], [0], [1], [0, 0, 1, 1], [], []>} : vector<256x128xf32>, vector<128x128xf32>, vector<256x128xf32> -> vector<256x128xf32>
    %c0_17 = arith.constant 0 : index
    %c0_18 = arith.constant 0 : index
    %34 = vector.load %arg7[%c0_17, %c0_18] : memref<1x128xf32, #tpu.memory_space<vmem>>, vector<1x128xf32>
    %35 = vector.broadcast %34 : vector<1x128xf32> to vector<256x128xf32>
    %36 = arith.addf %33, %35 : vector<256x128xf32>
    %37 = vector.shape_cast %36 : vector<256x128xf32> to vector<32x8x128xf32>
    %c0_19 = arith.constant 0 : index
    %c0_20 = arith.constant 0 : index
    %c0_21 = arith.constant 0 : index
    %38 = vector.load %arg8[%c0_19, %c0_20, %c0_21] : memref<32x8x128xf32, #tpu.memory_space<vmem>>, vector<32x8x128xf32>
    tpu.vector_store %arg8[%c0_19, %c0_20, %c0_21], %37 {strides = array<i32>} : memref<32x8x128xf32, #tpu.memory_space<vmem>>, vector<32x8x128xf32>,
    return
  }
  func.func @transform_0(%arg0: i32) -> (i32, i32, i32) {
    %c0_i32 = arith.constant 0 : i32
    %c0_i32_0 = arith.constant 0 : i32
    %c0_i32_1 = arith.constant 0 : i32
    return %arg0, %c0_i32, %c0_i32_0 : i32, i32, i32
  }
  func.func @transform_1(%arg0: i32) -> (i32, i32) {
    %c0_i32 = arith.constant 0 : i32
    %c0_i32_0 = arith.constant 0 : i32
    %c0_i32_1 = arith.constant 0 : i32
    return %c0_i32, %c0_i32_0 : i32, i32
  }
  func.func @transform_2(%arg0: i32) -> (i32, i32) {
    %c0_i32 = arith.constant 0 : i32
    %c0_i32_0 = arith.constant 0 : i32
    %c0_i32_1 = arith.constant 0 : i32
    return %c0_i32, %c0_i32_0 : i32, i32
  }
  func.func @transform_3(%arg0: i32) -> (i32, i32) {
    %c0_i32 = arith.constant 0 : i32
    %c0_i32_0 = arith.constant 0 : i32
    %c0_i32_1 = arith.constant 0 : i32
    return %c0_i32, %c0_i32_0 : i32, i32
  }
  func.func @transform_4(%arg0: i32) -> (i32, i32) {
    %c0_i32 = arith.constant 0 : i32
    %c0_i32_0 = arith.constant 0 : i32
    %c0_i32_1 = arith.constant 0 : i32
    return %c0_i32, %c0_i32_0 : i32, i32
  }
  func.func @transform_5(%arg0: i32) -> (i32, i32) {
    %c0_i32 = arith.constant 0 : i32
    %c0_i32_0 = arith.constant 0 : i32
    %c0_i32_1 = arith.constant 0 : i32
    return %c0_i32, %c0_i32_0 : i32, i32
  }
  func.func @transform_6(%arg0: i32) -> (i32, i32) {
    %c0_i32 = arith.constant 0 : i32
    %c0_i32_0 = arith.constant 0 : i32
    %c0_i32_1 = arith.constant 0 : i32
    return %c0_i32, %c0_i32_0 : i32, i32
  }
  func.func @transform_7(%arg0: i32) -> (i32, i32, i32) {
    %c0_i32 = arith.constant 0 : i32
    %c0_i32_0 = arith.constant 0 : i32
    %c0_i32_1 = arith.constant 0 : i32
    return %arg0, %c0_i32, %c0_i32_0 : i32, i32, i32
  }
}

</mosaic_0001>

<bundles_post_ra>
// kernel: tpu_custom_call.1
= control target key start
LH: loop header
LB: loop body
LE: loop exit
PB: predicated region body
PF: predicated region fallthrough
CT: control target
= control target key end

     0   :  { %s7699_s0 = inlined_call_operand.hbm [shape: f32[64,8,128], index: 0, kind: input, shape index: {}]   ;;  %s7700_s1 = inlined_call_operand.hbm [shape: f32[128,256], index: 1, kind: input, shape index: {}]   ;;  %s7701_s2 = inlined_call_operand.vmem [shape: f32[1,256], index: 2, kind: input, shape index: {}]   ;;  %s7702_s3 = inlined_call_operand.hbm [shape: f32[128,128], index: 3, kind: input, shape index: {}]   ;;  %s7703_s4 = inlined_call_operand.vmem [shape: f32[1,128], index: 4, kind: input, shape index: {}]   ;;  %s7704_s5 = inlined_call_operand.hbm [shape: f32[128,128], index: 5, kind: input, shape index: {}]   ;;  %s7705_s6 = inlined_call_operand.vmem [shape: f32[1,128], index: 6, kind: input, shape index: {}]   ;;  %s7706_s7 = inlined_call_operand.hbm [shape: f32[64,8,128], index: 7, kind: output, shape index: {}]  }
   0x1   :  { %7715 = sst [smem:[#allocation25_spill]] %s7700_s1 }
   0x2   :  { %12 = vsyncpa [#allocation3], 0 }
   0x3   :  { %14 = vsyncpa [#allocation3 + $0x1], 0 }
   0x4   :  { %15 = vsyncpa [#allocation6], 0 }
   0x5   :  { %16 = vsyncpa [#allocation9], 0 }
   0x6   :  { %17 = vsyncpa [#allocation4], 0 }
   0x7   :  { %19 = vsyncpa [#allocation4 + $0x1], 0  ;;  %s6505_s24 = smov 0   ;;  %s6507_s25 = smov 0  }
   0x8   :  { %s6509_s26 = smov 0   ;;  %s6511_s27 = smov 0  }
   0x9 LB: > { %s6526_s28 = sadd.s32 4294967295, %s6450_s27   ;;  %s5385_s29 = sadd.s32 4294967294, %s6450_s27   ;;  %s6450_s27 = sphi %s6511_s27, %s7757_s27   ;;  %s6446_s26 = sphi %s6509_s26, %s7756_s26   ;;  %s6442_s25 = sphi %s6507_s25, %s7755_s25   ;;  %s6438_s24 = sphi %s6505_s24, %s7754_s24  }
   0xa   : > { %p45_p0 = scmp.ne.s32.totalorder %s6442_s25, %s6438_s24  ;;  %p7707_p1 = scmp.eq.s32.totalorder %s6526_s28, 0 }
   0xb   : > { %p201_p3 = scmp.eq.s32.totalorder %s5385_s29, 1  ;;  %p5386_p5 = scmp.ge.s32.totalorder %s6450_s27, 1 }
   0xc   : > { %p6535_p4 = por %p7707_p1, %p45_p0  ;;  %p208_p7 = scmp.lt.s32.totalorder %s6450_s27, 3 }
   0xd   : > { %p6540_p6 = por %p201_p3, %p45_p0  ;;  %s6452_s10 = smov [#allocation5]  }
   0xe   : > { %s7716_s30 = scalar_select %p6535_p4, 1, 0 }
   0xf   : > { %s7717_s8 = scalar_select %p6540_p6, 1, 0 }
  0x10   : > { %p6545_p8 = pnand %p5386_p5, %p208_p7  ;;  %s220_s11 = sshll.u32 %s6452_s10, 4  ;;  %s6549_s11 = int_to_ptr.vmem [resolvable:$true] %s220_s11 }
  0x11   : > { %7718 = sst [smem:[#allocation15_spill]] %s7717_s8  ;;  %s6453_s13 = smov [#allocation7]  }
  0x12   : > { %s7719_s9 = scalar_select %p6545_p8, 1, 0 }
  0x13   : > { %p6033_p9 = pneg %p6545_p8  ;;  %s236_s14 = sshll.u32 %s6453_s13, 4  ;;  %s6560_s14 = int_to_ptr.vmem [resolvable:$true] %s236_s14 }
  0x14   : > { %s7721_s1 = sld [smem:[#allocation25_spill]] }
  0x15   : > { %p6556_p11 = pnand %p6033_p9, %p7707_p1 }
  0x17   : > { %p6570_p13 = pneg %p6556_p11 }
  0x1a   : > { %s6262_s17 = scalar_lea.hbm %s7721_s1, 4096 }
  0x1b   : > { %p6263_p12 = scmp.ne.s32.totalorder %s7721_s1, %s6262_s17  ;;  %p6269_p5 = scmp.lt.u32.totalorder %s6262_s17, %s7721_s1 }
  0x1d   : > { %p6265_p0 = pnand %p6570_p13, %p6263_p12 }
  0x1f   : > { %p6266_p3 = pneg %p6265_p0 }
  0x21   : > { %p6271_p7 = pnand %p6269_p5, %p6266_p3 }
  0x23   : > { %6274 = shalt.err (!%p6271_p7)
}
  0x24   : > { %s6275_s23 = scalar_lea.vmem %s6549_s11, 4096  ;;  %p6283_p2 = scmp.lt.s32.totalorder %s6549_s11, %s6549_s11 }
  0x25   : > { %p6276_p9 = scmp.ne.s32.totalorder %s6549_s11, %s6275_s23  ;;  %p6284_p6 = scmp.lt.s32.totalorder %s6275_s23, %s6275_s23 }
  0x27   : > { %p6278_p10 = pnand %p6276_p9, %p6570_p13  ;;  %p6285_p12 = por %p6284_p6, %p6283_p2 }
  0x29   : > { %p6279_p1 = pneg %p6278_p10 }
  0x2b   : > { %p6286_p0 = pnand %p6285_p12, %p6279_p1 }
  0x2d   : > { %6289 = shalt.err (!%p6286_p0)
}
  0x2e   : > { %s6454_s29 = smov 256   ;;  %s6455_s10 = smov 16  }
  0x2f   : > { %6036 = dma.hbm_to_vmem [thread:$0]  (!%p6556_p11), %s7721_s1, 4096, %s6549_s11, [#allocation6], %s6454_s29, %s6454_s29, %s6455_s10  }
  0x30   : > { %s6290_s18 = scalar_lea.hbm %s7702_s3, 2048 }
  0x31   : > { %p6291_p2 = scmp.ne.s32.totalorder %s7702_s3, %s6290_s18  ;;  %p6297_p10 = scmp.lt.u32.totalorder %s6290_s18, %s7702_s3 }
  0x33   : > { %p6293_p1 = pnand %p6291_p2, %p6570_p13 }
  0x35   : > { %p6294_p6 = pneg %p6293_p1 }
  0x37   : > { %p6299_p3 = pnand %p6297_p10, %p6294_p6 }
  0x39   : > { %6302 = shalt.err (!%p6299_p3)
}
  0x3a   : > { %s6303_s11 = scalar_lea.vmem %s6560_s14, 2048  ;;  %p6311_p12 = scmp.lt.s32.totalorder %s6560_s14, %s6560_s14 }
  0x3b   : > { %p6304_p5 = scmp.ne.s32.totalorder %s6560_s14, %s6303_s11  ;;  %p6312_p0 = scmp.lt.s32.totalorder %s6303_s11, %s6303_s11 }
  0x3d   : > { %p6306_p7 = pnand %p6304_p5, %p6570_p13  ;;  %p6313_p2 = por %p6312_p0, %p6311_p12 }
  0x3f   : > { %p6307_p9 = pneg %p6306_p7 }
  0x41   : > { %p6314_p1 = pnand %p6313_p2, %p6307_p9 }
  0x43   : > { %6317 = shalt.err (!%p6314_p1)
}
  0x44   : > { %s6456_s29 = smov 128   ;;  %s6457_s10 = smov 8  }
  0x45   : > { %6039 = dma.hbm_to_vmem [thread:$0]  (!%p6556_p11), %s7702_s3, 2048, %s6560_s14, [#allocation6], %s6456_s29, %s6456_s29, %s6457_s10  }
  0x46   : > { %s6458_s16 = smov [#allocation8]   ;;  %s6618_s18 = sadd.s32 1, %s6450_s27  }
  0x47   : > { %s252_s17 = sshll.u32 %s6458_s16, 4  ;;  %s6318_s22 = scalar_lea.hbm %s7704_s5, 2048  ;;  %s253_s17 = int_to_ptr.vmem [resolvable:$true] %s252_s17 }
  0x48   : > { %p6319_p6 = scmp.ne.s32.totalorder %s7704_s5, %s6318_s22  ;;  %p6325_p5 = scmp.lt.u32.totalorder %s6318_s22, %s7704_s5 }
  0x4a   : > { %p6321_p10 = pnand %p6319_p6, %p6570_p13 }
  0x4c   : > { %p6322_p3 = pneg %p6321_p10 }
  0x4e   : > { %p6327_p7 = pnand %p6325_p5, %p6322_p3 }
  0x50   : > { %6330 = shalt.err (!%p6327_p7)
}
  0x51   : > { %s6331_s14 = scalar_lea.vmem %s253_s17, 2048  ;;  %p6339_p2 = scmp.lt.s32.totalorder %s253_s17, %s253_s17 }
  0x52   : > { %p6332_p9 = scmp.ne.s32.totalorder %s253_s17, %s6331_s14  ;;  %p6340_p1 = scmp.lt.s32.totalorder %s6331_s14, %s6331_s14 }
  0x54   : > { %p6334_p12 = pnand %p6332_p9, %p6570_p13  ;;  %p6341_p4 = por %p6340_p1, %p6339_p2 }
  0x56   : > { %p6335_p0 = pneg %p6334_p12 }
  0x58   : > { %p6342_p8 = pnand %p6341_p4, %p6335_p0 }
  0x5a   : > { %6345 = shalt.err (!%p6342_p8)
}
  0x5b   : > { %6042 = dma.hbm_to_vmem [thread:$0]  (!%p6556_p11), %s7704_s5, 2048, %s253_s17, [#allocation9], %s6456_s29, %s6456_s29, %s6457_s10  }
  0x5c   : > { %s29_s20 = ssub.s32 %s6450_s27, %s6618_s18  ;;  %s32_s12 = sadd.s32 1, %s6446_s26 }
  0x5d   : > { %p30_p4 = scmp.eq.s32.totalorder %s29_s20, 0  ;;  %p39_p8 = scmp.ne.s32.totalorder %s6446_s26, %s6442_s25 }
  0x5e   : > { %p40_p13 = scmp.eq.s32.totalorder %s6450_s27, 0  ;;  %p6054_p6 = scmp.lt.s32.totalorder %s6450_s27, 2 }
  0x5f   : > { %s6649_s13 = scalar_select %p30_p4, %s6446_s26, %s32_s12  }
  0x60   : > { %p41_p10 = por %p40_p13, %p39_p8  ;;  %p7723_p3 = scmp.eq.s32.totalorder %s6526_s28, 1 }
  0x61   : > { %s269_s16 = sand.u32 1, %s6446_s26   ;;  %s5439_s19 = sshll.u32 %s6450_s27, 12 }
  0x62   : > { %p6653_p5 = por %p7723_p3, %p39_p8  ;;  %s5391_s21 = sshll.u32 %s269_s16, 8 }
  0x63   : > { %s6662_s17 = scalar_lea.hbm %s7699_s0, %s5439_s19  ;;  %s273_s11 = scalar_lea.vmem [#allocation2], %s5391_s21 }
  0x64   : > { %s280_s14 = sshll.u32 %s273_s11, 4  ;;  %p6664_p11 = pnand %p6054_p6, %p41_p10  ;;  %s6668_s14 = int_to_ptr.vmem [resolvable:$true] %s280_s14 }
  0x65   : > { %s6670_s8 = scalar_lea.sflag [#allocation3], %s269_s16  ;;  %s6346_s20 = scalar_lea.hbm %s6662_s17, 4096 }
  0x66   : > { %p6347_p7 = scmp.ne.s32.totalorder %s6662_s17, %s6346_s20  ;;  %p6348_p9 = pneg %p6664_p11 }
  0x67   : > { %s6351_s21 = scalar_lea.hbm %s7699_s0, 8192  ;;  %p6352_p2 = scmp.lt.u32.totalorder %s6662_s17, %s7699_s0 }
  0x68   : > { %p6349_p12 = pnand %p6348_p9, %p6347_p7  ;;  %p6353_p1 = scmp.lt.u32.totalorder %s6351_s21, %s6346_s20 }
  0x69   : > { %p6355_p8 = scmp.lt.u32.totalorder %s6346_s20, %s6662_s17 }
  0x6a   : > { %p6350_p0 = pneg %p6349_p12  ;;  %p6354_p4 = por %p6353_p1, %p6352_p2 }
  0x6c   : > { %p6356_p13 = por %p6355_p8, %p6354_p4 }
  0x6e   : > { %p6357_p6 = pnand %p6356_p13, %p6350_p0 }
  0x70   : > { %6360 = shalt.err (!%p6357_p6)
}
  0x71   : > { %s6361_s16 = scalar_lea.vmem %s6668_s14, 4096  ;;  %s6459_s11 = smov [#allocation2]  }
  0x72   : > { %p6362_p10 = scmp.ne.s32.totalorder %s6668_s14, %s6361_s16  ;;  %s6366_s12 = sshll.u32 %s6459_s11, 4  ;;  %s6367_s12 = int_to_ptr.vmem [resolvable:$false] %s6366_s12 }
  0x73   : > { %s6368_s19 = scalar_lea.vmem %s6367_s12, 8192  ;;  %p6369_p12 = scmp.lt.s32.totalorder %s6668_s14, %s6367_s12 }
  0x74   : > { %p6364_p3 = pnand %p6362_p10, %p6348_p9  ;;  %p6370_p2 = scmp.lt.s32.totalorder %s6368_s19, %s6361_s16 }
  0x76   : > { %p6365_p7 = pneg %p6364_p3  ;;  %p6371_p1 = por %p6370_p2, %p6369_p12 }
  0x78   : > { %p6372_p4 = pnand %p6371_p1, %p6365_p7 }
  0x7a   : > { %6375 = shalt.err (!%p6372_p4)
}
  0x7b   : > { %6046 = dma.hbm_to_vmem [thread:$0]  (!%p6664_p11), %s6662_s17, 4096, %s6668_s14, %s6670_s8, %s6456_s29, %s6456_s29, %s6457_s10  }
  0x7c   : > { %p7726_p9 = scmp.ne.s32.totalorder %s7719_s9, 0 }
  0x7e   : > { %292 = sbr.rel (%p7726_p9) target bundleno = 1268 (0x4f4), region = 48 }
  0x85   : > { %s6704_s20 = sand.u32 1, %s6442_s25   ;;  %p7727_p0 = scmp.ne.s32.totalorder %s7716_s30, 0 }
  0x86   : > { %s5395_s21 = sshll.u32 %s6704_s20, 8  ;;  %s295_s22 = scalar_lea.sflag [#allocation3], %s6704_s20 }
  0x87   : > { %s6710_s1 = scalar_lea.vmem [#allocation2], %s5395_s21 }
  0x88   : > { %6421 = dma.done.wait (%p7727_p0), %s295_s22, 4096  }
  0x89   : > { %6423 = vsyncadd (%p7727_p0), %s295_s22, 4294963200  ;;  %p7728_p11 = scmp.eq.s32.totalorder %s6526_s28, 0 }
  0x8b   : > { %6425 = dma.done.wait (%p7728_p11), [#allocation6], 6144   ;;  %p7729_p8 = pmov %p7728_p11 }
  0x8d   : > { %6427 = vsyncadd (%p7729_p8), [#allocation6], 4294961152  ;;  %p7730_p13 = pmov %p7729_p8 }
  0x8e   : > { %p7731_p6 = pmov %p7729_p8 }
  0x8f   : > { %6429 = dma.done.wait (%p7730_p13), [#allocation9], 2048  }
  0x90   : > { %6431 = vsyncadd (%p7731_p6), [#allocation9], 4294965248  ;;  %v7711_v0 = vmov 0.0   ;;  %v376_v1 = vld [vmem:[#allocation5 + $0x8] sm:$0xff]  ;;  %v378_v2 = vld [vmem:[#allocation5 + $0x18] sm:$0xff]  ;;  %vm6461_vm0 = vmmov 0  }
  0x91   : > { %483 = vmatprep.mubr.f32.mxu0 %v7711_v0  ;;  %5601 = vmatprep.subr.mxu1 %v7711_v0  ;;  %v375_v3 = vld [vmem:[#allocation5] sm:$0xff]  ;;  %v5921_v4 = vpack.c.bf16 %v378_v2, %v376_v1  ;;  %v377_v5 = vld [vmem:[#allocation5 + $0x10] sm:$0xff]  ;;  %v380_v6 = vld [vmem:[#allocation5 + $0x28] sm:$0xff]  ;;  %vm1252_vm1 = vcmask 64512   ;;  %s7584_s8 = scalar_lea.vmem [#allocation10], %s5395_s21  ;;  %s5440_s23 = sshll.u32 %s6526_s28, 12 }
  0x92   : > { %v382_v7 = vld [vmem:[#allocation5 + $0x38] sm:$0xff]  ;;  %v5923_v8 = vpack.c.bf16 %v377_v5, %v375_v3  ;;  %v379_v10 = vld [vmem:[#allocation5 + $0x20] sm:$0xff]  ;;  %v381_v11 = vld [vmem:[#allocation5 + $0x30] sm:$0xff]  ;;  %s5283_s16 = sshll.u32 %s7584_s8, 4  ;;  %s7650_s19 = scalar_lea.hbm %s7706_s7, %s5440_s23  ;;  %s7652_s16 = int_to_ptr.vmem [resolvable:$true] %s5283_s16 }
  0x93   : > { %v5925_v9 = vpack.c.bf16 %v382_v7, %v380_v6  ;;  %v384_v12 = vld [vmem:[#allocation5 + $0x48] sm:$0xff]  ;;  %5922 = vmatprep.subr.bf16.mxu0 %v5921_v4  ;;  %v386_v13 = vld [vmem:[#allocation5 + $0x58] sm:$0xff]  ;;  %v5927_v14 = vpack.c.bf16 %v381_v11, %v379_v10  ;;  %v383_v16 = vld [vmem:[#allocation5 + $0x40] sm:$0xff]  ;;  %s5270_s28 = scalar_lea.sflag [#allocation4], %s6704_s20  ;;  %s6376_s21 = scalar_lea.vmem %s7652_s16, 4096 }
  0x94   : > { %5924 = vmatpush1.bf16.msra.mxu0 %v5923_v8  ;;  %v5929_v15 = vpack.c.bf16 %v386_v13, %v384_v12  ;;  %v385_v17 = vld [vmem:[#allocation5 + $0x50] sm:$0xff]  ;;  %v388_v18 = vld [vmem:[#allocation5 + $0x68] sm:$0xff]  ;;  %v390_v19 = vld [vmem:[#allocation5 + $0x78] sm:$0xff]  ;;  %p6377_p10 = scmp.ne.s32.totalorder %s7652_s16, %s6376_s21  ;;  %s6462_s22 = smov [#allocation10]  }
  0x95   : > { %5926 = vmatprep.subr.bf16.mxu0 %v5925_v9  ;;  %v5931_v20 = vpack.c.bf16 %v385_v17, %v383_v16  ;;  %v5933_v21 = vpack.c.bf16 %v390_v19, %v388_v18  ;;  %v387_v22 = vld [vmem:[#allocation5 + $0x60] sm:$0xff]  ;;  %v389_v23 = vld [vmem:[#allocation5 + $0x70] sm:$0xff]  ;;  %v392_v24 = vld [vmem:[#allocation5 + $0x88] sm:$0xff]  ;;  %v409_v18 = vlaneseq }
  0x96   : > { %v394_v25 = vld [vmem:[#allocation5 + $0x98] sm:$0xff]  ;;  %v5935_v26 = vpack.c.bf16 %v389_v23, %v387_v22  ;;  %v391_v28 = vld [vmem:[#allocation5 + $0x80] sm:$0xff]  ;;  %v393_v29 = vld [vmem:[#allocation5 + $0x90] sm:$0xff]  ;;  %p6378_p3 = pnand %p6377_p10, %p6653_p5 }
  0x97   : > { %v5937_v27 = vpack.c.bf16 %v394_v25, %v392_v24  ;;  %v396_v30 = vld [vmem:[#allocation5 + $0xa8] sm:$0xff]  ;;  %v398_v31 = vld [vmem:[#allocation5 + $0xb8] sm:$0xff]  ;;  %v5939_v32 = vpack.c.bf16 %v393_v29, %v391_v28  ;;  %v395_v34 = vld [vmem:[#allocation5 + $0xa0] sm:$0xff]  ;;  %v410_v19 = vshrl.u32 %v409_v18, 7 }
  0x98   : > { %5928 = vmatpush1.bf16.msra.mxu0 %v5927_v14  ;;  %v5941_v33 = vpack.c.bf16 %v398_v31, %v396_v30  ;;  %v397_v35 = vld [vmem:[#allocation5 + $0xb0] sm:$0xff]  ;;  %v400_v36 = vld [vmem:[#allocation5 + $0xc8] sm:$0xff]  ;;  %v402_v37 = vld [vmem:[#allocation5 + $0xd8] sm:$0xff]  ;;  %p6379_p7 = pneg %p6378_p3 }
  0x99   : > { %5930 = vmatprep.subr.bf16.mxu0 %v5929_v15  ;;  %v5943_v38 = vpack.c.bf16 %v397_v35, %v395_v34  ;;  %v5945_v39 = vpack.c.bf16 %v402_v37, %v400_v36  ;;  %v399_v40 = vld [vmem:[#allocation5 + $0xc0] sm:$0xff]  ;;  %v401_v41 = vld [vmem:[#allocation5 + $0xd0] sm:$0xff]  ;;  %v404_v42 = vld [vmem:[#allocation5 + $0xe8] sm:$0xff]  ;;  %v415_v22 = vsub.s32 1, %v410_v19 }
  0x9a   : > { %v406_v43 = vld [vmem:[#allocation5 + $0xf8] sm:$0xff]  ;;  %v5947_v44 = vpack.c.bf16 %v401_v41, %v399_v40  ;;  %v403_v46 = vld [vmem:[#allocation5 + $0xe0] sm:$0xff]  ;;  %v405_v47 = vld [vmem:[#allocation5 + $0xf0] sm:$0xff] }
  0x9b   : > { %v5949_v45 = vpack.c.bf16 %v406_v43, %v404_v42  ;;  %v5951_v48 = vpack.c.bf16 %v405_v47, %v403_v46  ;;  %v343_v49 = vld [vmem:[%s6710_s1] sm:$0xff]  ;;  %v344_v50 = vld [vmem:[%s6710_s1 + $0x8] sm:$0xff]  ;;  %v345_v51 = vld [vmem:[%s6710_s1 + $0x10] sm:$0xff] }
  0x9c   : > { %5932 = vmatpush1.bf16.msra.mxu0 %v5931_v20  ;;  %v346_v52 = vld [vmem:[%s6710_s1 + $0x18] sm:$0xff]  ;;  %v347_v53 = vld [vmem:[%s6710_s1 + $0x20] sm:$0xff]  ;;  %v348_v54 = vld [vmem:[%s6710_s1 + $0x28] sm:$0xff]  ;;  %v6789_v20 = vsub.s32 0, %v410_v19 }
  0x9d   : > { %5934 = vmatprep.subr.bf16.mxu0 %v5933_v21  ;;  %v349_v55 = vld [vmem:[%s6710_s1 + $0x30] sm:$0xff]  ;;  %v350_v56 = vld [vmem:[%s6710_s1 + $0x38] sm:$0xff]  ;;  %v351_v57 = vld [vmem:[%s6710_s1 + $0x40] sm:$0xff] }
  0x9e   : > { %v352_v58 = vld [vmem:[%s6710_s1 + $0x48] sm:$0xff]  ;;  %v353_v59 = vld [vmem:[%s6710_s1 + $0x50] sm:$0xff]  ;;  %v354_v60 = vld [vmem:[%s6710_s1 + $0x58] sm:$0xff]  ;;  %7732 = vst [vmem:[#allocation16_spill] sm:$0xff] %v6789_v20 }
  0x9f   : > { %v355_v61 = vld [vmem:[%s6710_s1 + $0x60] sm:$0xff]  ;;  %v356_v62 = vld [vmem:[%s6710_s1 + $0x68] sm:$0xff]  ;;  %v357_v63 = vld [vmem:[%s6710_s1 + $0x70] sm:$0xff] }
  0xa0   : > { %5936 = vmatpush1.bf16.msra.mxu0 %v5935_v26  ;;  %v358_v1 = vld [vmem:[%s6710_s1 + $0x78] sm:$0xff]  ;;  %v359_v2 = vld [vmem:[%s6710_s1 + $0x80] sm:$0xff]  ;;  %v360_v3 = vld [vmem:[%s6710_s1 + $0x88] sm:$0xff] }
  0xa1   : > { %5938 = vmatprep.subr.bf16.mxu0 %v5937_v27  ;;  %v361_v4 = vld [vmem:[%s6710_s1 + $0x90] sm:$0xff]  ;;  %v362_v5 = vld [vmem:[%s6710_s1 + $0x98] sm:$0xff]  ;;  %v363_v6 = vld [vmem:[%s6710_s1 + $0xa0] sm:$0xff] }
  0xa2   : > { %v364_v7 = vld [vmem:[%s6710_s1 + $0xa8] sm:$0xff]  ;;  %v365_v8 = vld [vmem:[%s6710_s1 + $0xb0] sm:$0xff]  ;;  %v366_v9 = vld [vmem:[%s6710_s1 + $0xb8] sm:$0xff] }
  0xa3   : > { %v367_v10 = vld [vmem:[%s6710_s1 + $0xc0] sm:$0xff]  ;;  %v368_v11 = vld [vmem:[%s6710_s1 + $0xc8] sm:$0xff]  ;;  %v369_v12 = vld [vmem:[%s6710_s1 + $0xd0] sm:$0xff] }
  0xa4   : > { %5940 = vmatpush1.bf16.msra.mxu0 %v5939_v32  ;;  %v370_v13 = vld [vmem:[%s6710_s1 + $0xd8] sm:$0xff]  ;;  %v371_v14 = vld [vmem:[%s6710_s1 + $0xe0] sm:$0xff]  ;;  %v372_v15 = vld [vmem:[%s6710_s1 + $0xe8] sm:$0xff] }
  0xa5   : > { %5942 = vmatprep.subr.bf16.mxu0 %v5941_v33  ;;  %v373_v16 = vld [vmem:[%s6710_s1 + $0xf0] sm:$0xff]  ;;  %v374_v17 = vld [vmem:[%s6710_s1 + $0xf8] sm:$0xff]  ;;  %v407_v21 = vld [vmem:[%s7701_s2] sm:$0x3] }
  0xa6   : > { %v6795_v23 = vrot.slane %v407_v21, %v6789_v20  ;;  %v6797_v24 = vrot.slane %v407_v21, %v415_v22 }
  0xa8   : > { %5944 = vmatpush1.bf16.msra.mxu0 %v5943_v38 }
  0xa9   : > { %5946 = vmatprep.subr.bf16.mxu0 %v5945_v39 }
  0xac   : > { %5948 = vmatpush1.bf16.msra.mxu0 %v5947_v44 }
  0xad   : > { %5950 = vmatprep.subr.bf16.mxu0 %v5949_v45 }
  0xb0   : > { %5952 = vmatpush1.bf16.msra.mxu0 %v5951_v48 }
  0xb3   : > { %484 = vmatmul.mubr.f32.vlgmr.msra.gmra.mrb[0].mxu0 %v343_v49 }
  0xb4   : > { %489 = vmatprep.mubr.f32.mxu0 %v7711_v0 }
  0xb7   : > { %490 = vmatmul.mubr.f32.gmra.mrb[2].mxu0 %v344_v50 }
  0xb8   : > { %495 = vmatprep.mubr.f32.mxu0 %v7711_v0 }
  0xbb   : > { %496 = vmatmul.mubr.f32.gmra.mrb[4].mxu0 %v345_v51 }
  0xbc   : > { %501 = vmatprep.mubr.f32.mxu0 %v7711_v0 }
  0xbf   : > { %502 = vmatmul.mubr.f32.gmra.mrb[6].mxu0 %v346_v52 }
  0xc0   : > { %507 = vmatprep.mubr.f32.mxu0 %v7711_v0 }
  0xc3   : > { %508 = vmatmul.mubr.f32.gmra.mrb[8].mxu0 %v347_v53 }
  0xc4   : > { %513 = vmatprep.mubr.f32.mxu0 %v7711_v0 }
  0xc7   : > { %514 = vmatmul.mubr.f32.gmra.mrb[10].mxu0 %v348_v54 }
  0xc8   : > { %519 = vmatprep.mubr.f32.mxu0 %v7711_v0 }
  0xcb   : > { %520 = vmatmul.mubr.f32.gmra.mrb[12].mxu0 %v349_v55 }
  0xcc   : > { %525 = vmatprep.mubr.f32.mxu0 %v7711_v0 }
  0xcf   : > { %526 = vmatmul.mubr.f32.gmra.mrb[14].mxu0 %v350_v56 }
  0xd0   : > { %531 = vmatprep.mubr.f32.mxu0 %v7711_v0 }
  0xd3   : > { %532 = vmatmul.mubr.f32.gmra.mrb[16].mxu0 %v351_v57 }
  0xd4   : > { %537 = vmatprep.mubr.f32.mxu0 %v7711_v0 }
  0xd7   : > { %538 = vmatmul.mubr.f32.gmra.mrb[18].mxu0 %v352_v58 }
  0xd8   : > { %543 = vmatprep.mubr.f32.mxu0 %v7711_v0 }
  0xdb   : > { %544 = vmatmul.mubr.f32.gmra.mrb[20].mxu0 %v353_v59 }
  0xdc   : > { %549 = vmatprep.mubr.f32.mxu0 %v7711_v0 }
  0xdf   : > { %550 = vmatmul.mubr.f32.gmra.mrb[22].mxu0 %v354_v60 }
  0xe0   : > { %555 = vmatprep.mubr.f32.mxu0 %v7711_v0 }
  0xe3   : > { %556 = vmatmul.mubr.f32.gmra.mrb[24].mxu0 %v355_v61 }
  0xe4   : > { %561 = vmatprep.mubr.f32.mxu0 %v7711_v0 }
  0xe7   : > { %562 = vmatmul.mubr.f32.gmra.mrb[26].mxu0 %v356_v62 }
  0xe8   : > { %567 = vmatprep.mubr.f32.mxu0 %v7711_v0 }
  0xeb   : > { %568 = vmatmul.mubr.f32.gmra.mrb[28].mxu0 %v357_v63 }
  0xec   : > { %573 = vmatprep.mubr.f32.mxu0 %v7711_v0 }
  0xef   : > { %574 = vmatmul.mubr.f32.gmra.mrb[30].mxu0 %v358_v1 }
  0xf0   : > { %579 = vmatprep.mubr.f32.mxu0 %v7711_v0 }
  0xf3   : > { %580 = vmatmul.mubr.f32.gmra.mrb[32].mxu0 %v359_v2 }
  0xf4   : > { %585 = vmatprep.mubr.f32.mxu0 %v7711_v0 }
  0xf7   : > { %586 = vmatmul.mubr.f32.gmra.mrb[34].mxu0 %v360_v3 }
  0xf8   : > { %591 = vmatprep.mubr.f32.mxu0 %v7711_v0 }
  0xfb   : > { %592 = vmatmul.mubr.f32.gmra.mrb[36].mxu0 %v361_v4 }
  0xfc   : > { %597 = vmatprep.mubr.f32.mxu0 %v7711_v0 }
  0xff   : > { %598 = vmatmul.mubr.f32.gmra.mrb[38].mxu0 %v362_v5 }
 0x100   : > { %603 = vmatprep.mubr.f32.mxu0 %v7711_v0 }
 0x103   : > { %604 = vmatmul.mubr.f32.gmra.mrb[40].mxu0 %v363_v6 }
 0x104   : > { %609 = vmatprep.mubr.f32.mxu0 %v7711_v0 }
 0x107   : > { %610 = vmatmul.mubr.f32.gmra.mrb[42].mxu0 %v364_v7 }
 0x108   : > { %615 = vmatprep.mubr.f32.mxu0 %v7711_v0 }
 0x10b   : > { %616 = vmatmul.mubr.f32.gmra.mrb[44].mxu0 %v365_v8 }
 0x10c   : > { %621 = vmatprep.mubr.f32.mxu0 %v7711_v0 }
 0x10f   : > { %622 = vmatmul.mubr.f32.gmra.mrb[46].mxu0 %v366_v9 }
 0x110   : > { %627 = vmatprep.mubr.f32.mxu0 %v7711_v0 }
 0x113   : > { %628 = vmatmul.mubr.f32.gmra.mrb[48].mxu0 %v367_v10 }
 0x114   : > { %633 = vmatprep.mubr.f32.mxu0 %v7711_v0 }
 0x117   : > { %634 = vmatmul.mubr.f32.gmra.mrb[50].mxu0 %v368_v11 }
 0x118   : > { %639 = vmatprep.mubr.f32.mxu0 %v7711_v0 }
 0x11b   : > { %640 = vmatmul.mubr.f32.gmra.mrb[52].mxu0 %v369_v12 }
 0x11c   : > { %645 = vmatprep.mubr.f32.mxu0 %v7711_v0 }
 0x11f   : > { %646 = vmatmul.mubr.f32.gmra.mrb[54].mxu0 %v370_v13 }
 0x120   : > { %651 = vmatprep.mubr.f32.mxu0 %v7711_v0 }
 0x123   : > { %652 = vmatmul.mubr.f32.gmra.mrb[56].mxu0 %v371_v14 }
 0x124   : > { %657 = vmatprep.mubr.f32.mxu0 %v7711_v0 }
 0x127   : > { %658 = vmatmul.mubr.f32.gmra.mrb[58].mxu0 %v372_v15 }
 0x128   : > { %663 = vmatprep.mubr.f32.mxu0 %v7711_v0 }
 0x12b   : > { %664 = vmatmul.mubr.f32.gmra.mrb[60].mxu0 %v373_v16 }
 0x12c   : > { %669 = vmatprep.mubr.f32.mxu0 %v7711_v0 }
 0x12f   : > { %670 = vmatmul.mubr.f32.gmra.mrb[62].mxu0 %v374_v17 }
 0x186   : > { %v485_v25 = vpop.f32.mrb[0].mxu0 }
 0x187   : > { %v486_v26 = vadd.f32 %v485_v25, %v6795_v23  ;;  %v487_v27 = vpop.f32.mrb[1].mxu0 }
 0x188   : > { %v488_v28 = vadd.f32 %v487_v27, %v6797_v24 }
 0x189   : > { %5602 = vmatpush3.msra.mxu1 %v486_v26 }
 0x18a   : > { %v676_v29 = vrot.slane %v488_v28, 4  ;;  %v6801_v30 = vpop.f32.mrb[2].mxu0  ;;  %5606 = vmatprep.subr.mxu1 %v7711_v0 }
 0x18b   : > { %v493_v31 = vpop.f32.mrb[3].mxu0 }
 0x18c   : > { %v677_v32 = vmax.f32 %v488_v28, %v676_v29  ;;  %v494_v33 = vadd.f32 %v493_v31, %v6797_v24 }
 0x18e   : > { %v678_v34 = vrot.slane %v677_v32, 2  ;;  %v682_v35 = vrot.slane %v494_v33, 4  ;;  %v6805_v36 = vpop.f32.mrb[4].mxu0 }
 0x18f   : > { %v499_v37 = vpop.f32.mrb[5].mxu0 }
 0x190   : > { %v679_v38 = vmax.f32 %v677_v32, %v678_v34  ;;  %v683_v39 = vmax.f32 %v494_v33, %v682_v35  ;;  %v500_v40 = vadd.f32 %v499_v37, %v6797_v24 }
 0x192   : > { %v680_v41 = vrot.slane %v679_v38, 1  ;;  %v684_v42 = vrot.slane %v683_v39, 2  ;;  %v688_v43 = vrot.slane %v500_v40, 4  ;;  %v6808_v44 = vpop.f32.mrb[6].mxu0 }
 0x193   : > { %v505_v45 = vpop.f32.mrb[7].mxu0 }
 0x194   : > { %v681_v46 = vmax.f32 %v679_v38, %v680_v41  ;;  %v685_v47 = vmax.f32 %v683_v39, %v684_v42  ;;  %v689_v48 = vmax.f32 %v500_v40, %v688_v43  ;;  %v506_v49 = vadd.f32 %v505_v45, %v6797_v24 }
 0x196   : > { %v868_v50 = vsub.f32 %v488_v28, %v681_v46  ;;  %v686_v51 = vrot.slane %v685_v47, 1  ;;  %v690_v52 = vrot.slane %v689_v48, 2  ;;  %v694_v53 = vrot.slane %v506_v49, 4  ;;  %v6811_v54 = vpop.f32.mrb[8].mxu0 }
 0x197   : > { %v511_v55 = vpop.f32.mrb[9].mxu0 }
 0x198   : > { %v900_v56 = vmul.f32 1.442695, %v868_v50  ;;  %v687_v57 = vmax.f32 %v685_v47, %v686_v51  ;;  %v691_v58 = vmax.f32 %v689_v48, %v690_v52  ;;  %v695_v59 = vmax.f32 %v506_v49, %v694_v53 }
 0x199   : > { %v512_v60 = vadd.f32 %v511_v55, %v6797_v24 }
 0x19a   : > { %6102 = vpow2.f32 %v900_v56  ;;  %v869_v61 = vsub.f32 %v494_v33, %v687_v57  ;;  %v692_v62 = vrot.slane %v691_v58, 1  ;;  %v696_v63 = vrot.slane %v695_v59, 2  ;;  %v6814_v1 = vpop.f32.mrb[10].mxu0 }
 0x19b   : > { %v700_v2 = vrot.slane %v512_v60, 4  ;;  %v517_v3 = vpop.f32.mrb[11].mxu0 }
 0x19c   : > { %v902_v4 = vmul.f32 1.442695, %v869_v61  ;;  %v693_v5 = vmax.f32 %v691_v58, %v692_v62  ;;  %v697_v6 = vmax.f32 %v695_v59, %v696_v63  ;;  %v6817_v7 = vadd.f32 %v517_v3, %v6797_v24 }
 0x19d   : > { %v701_v8 = vmax.f32 %v512_v60, %v700_v2 }
 0x19e   : > { %6104 = vpow2.f32 %v902_v4  ;;  %v870_v9 = vsub.f32 %v500_v40, %v693_v5  ;;  %v698_v10 = vrot.slane %v697_v6, 1  ;;  %v706_v11 = vrot.slane %v6817_v7, 4  ;;  %v6820_v12 = vpop.f32.mrb[12].mxu0 }
 0x19f   : > { %v702_v13 = vrot.slane %v701_v8, 2  ;;  %v523_v14 = vpop.f32.mrb[13].mxu0 }
 0x1a0   : > { %v904_v15 = vmul.f32 1.442695, %v870_v9  ;;  %v699_v16 = vmax.f32 %v697_v6, %v698_v10  ;;  %v707_v17 = vmax.f32 %v6817_v7, %v706_v11  ;;  %v6824_v18 = vadd.f32 %v523_v14, %v6797_v24 }
 0x1a1   : > { %v703_v19 = vmax.f32 %v701_v8, %v702_v13 }
 0x1a2   : > { %6106 = vpow2.f32 %v904_v15  ;;  %v871_v21 = vsub.f32 %v506_v49, %v699_v16  ;;  %v708_v22 = vrot.slane %v707_v17, 2  ;;  %v712_v25 = vrot.slane %v6824_v18, 4  ;;  %v6827_v26 = vpop.f32.mrb[14].mxu0 }
 0x1a3   : > { %v704_v27 = vrot.slane %v703_v19, 1  ;;  %v529_v28 = vpop.f32.mrb[15].mxu0 }
 0x1a4   : > { %v6829_v29 = vpop.eup %6102  ;;  %v906_v31 = vmul.f32 1.442695, %v871_v21  ;;  %v709_v32 = vmax.f32 %v707_v17, %v708_v22  ;;  %v713_v33 = vmax.f32 %v6824_v18, %v712_v25  ;;  %v6833_v34 = vadd.f32 %v529_v28, %v6797_v24 }
 0x1a5   : > { %v705_v35 = vmax.f32 %v703_v19, %v704_v27  ;;  %v964_v37 = vrot.slane %v6829_v29, 4 }
 0x1a6   : > { %v710_v38 = vrot.slane %v709_v32, 1  ;;  %v714_v39 = vrot.slane %v713_v33, 2  ;;  %v718_v40 = vrot.slane %v6833_v34, 4  ;;  %v6837_v41 = vpop.f32.mrb[16].mxu0  ;;  %6108 = vpow2.f32 %v906_v31 }
 0x1a7   : > { %v872_v42 = vsub.f32 %v512_v60, %v705_v35  ;;  %v535_v43 = vpop.f32.mrb[17].mxu0  ;;  %v965_v45 = vadd.f32 %v6829_v29, %v964_v37 }
 0x1a8   : > { %v6840_v46 = vpop.eup %6104  ;;  %v715_v47 = vmax.f32 %v713_v33, %v714_v39  ;;  %v719_v48 = vmax.f32 %v6833_v34, %v718_v40  ;;  %v6844_v49 = vadd.f32 %v535_v43, %v6797_v24  ;;  %v711_v53 = vmax.f32 %v709_v32, %v710_v38 }
 0x1a9   : > { %v908_v50 = vmul.f32 1.442695, %v872_v42  ;;  %v966_v51 = vrot.slane %v965_v45, 2  ;;  %v970_v52 = vrot.slane %v6840_v46, 4 }
 0x1aa   : > { %v716_v55 = vrot.slane %v715_v47, 1  ;;  %v720_v56 = vrot.slane %v719_v48, 2  ;;  %v724_v57 = vrot.slane %v6844_v49, 4  ;;  %v6848_v58 = vpop.f32.mrb[18].mxu0  ;;  %v873_v9 = vsub.f32 %v6817_v7, %v711_v53 }
 0x1ab   : > { %v541_v59 = vpop.f32.mrb[19].mxu0  ;;  %v967_v60 = vadd.f32 %v966_v51, %v965_v45  ;;  %v971_v61 = vadd.f32 %v6840_v46, %v970_v52  ;;  %6110 = vpow2.f32 %v908_v50 }
 0x1ac   : > { %v6851_v62 = vpop.eup %6106  ;;  %v717_v63 = vmax.f32 %v715_v47, %v716_v55  ;;  %v721_v2 = vmax.f32 %v719_v48, %v720_v56  ;;  %v725_v3 = vmax.f32 %v6844_v49, %v724_v57  ;;  %v6855_v4 = vadd.f32 %v541_v59, %v6797_v24 }
 0x1ad   : > { %v968_v5 = vrot.slane %v967_v60, 1  ;;  %v972_v6 = vrot.slane %v971_v61, 2  ;;  %v976_v8 = vrot.slane %v6851_v62, 4  ;;  %v910_v31 = vmul.f32 1.442695, %v873_v9 }
 0x1ae   : > { %v722_v10 = vrot.slane %v721_v2, 1  ;;  %v726_v11 = vrot.slane %v725_v3, 2  ;;  %v6859_v13 = vpop.f32.mrb[20].mxu0  ;;  %v730_v14 = vrot.slane %v6855_v4, 4  ;;  %v874_v19 = vsub.f32 %v6824_v18, %v717_v63 }
 0x1af   : > { %v547_v15 = vpop.f32.mrb[21].mxu0  ;;  %v969_v16 = vadd.f32 %v968_v5, %v967_v60  ;;  %v973_v17 = vadd.f32 %v972_v6, %v971_v61  ;;  %v977_v7 = vadd.f32 %v6851_v62, %v976_v8 }
 0x1b0   : > { %v723_v21 = vmax.f32 %v721_v2, %v722_v10  ;;  %v6864_v22 = vadd.f32 %v547_v15, %v6797_v24  ;;  %v731_v25 = vmax.f32 %v6855_v4, %v730_v14  ;;  %v6868_v28 = vpop.eup %6108  ;;  %v727_v32 = vmax.f32 %v725_v3, %v726_v11 }
 0x1b1   : > { %6112 = vrcp.f32 %v969_v16  ;;  %v974_v27 = vrot.slane %v973_v17, 1  ;;  %v978_v39 = vrot.slane %v977_v7, 2  ;;  %v912_v40 = vmul.f32 1.442695, %v874_v19 }
 0x1b2   : > { %v736_v33 = vrot.slane %v6864_v22, 4  ;;  %v6871_v35 = vpop.f32.mrb[22].mxu0  ;;  %v732_v37 = vrot.slane %v731_v25, 2  ;;  %v875_v45 = vsub.f32 %v6833_v34, %v723_v21  ;;  %v982_v48 = vrot.slane %v6868_v28, 4 }
 0x1b3   : > { %v553_v18 = vpop.f32.mrb[23].mxu0  ;;  %v975_v38 = vadd.f32 %v974_v27, %v973_v17  ;;  %v979_v47 = vadd.f32 %v978_v39, %v977_v7  ;;  %v728_v51 = vrot.slane %v727_v32, 1 }
 0x1b4   : > { %v737_v42 = vmax.f32 %v6864_v22, %v736_v33  ;;  %v6875_v43 = vadd.f32 %v553_v18, %v6797_v24  ;;  %v733_v56 = vmax.f32 %v731_v25, %v732_v37  ;;  %v983_v60 = vadd.f32 %v6868_v28, %v982_v48 }
 0x1b5   : > { %6114 = vrcp.f32 %v975_v38  ;;  %v6879_v50 = vpop.eup %6110  ;;  %v980_v59 = vrot.slane %v979_v47, 1  ;;  %v914_v2 = vmul.f32 1.442695, %v875_v45  ;;  %v729_v8 = vmax.f32 %v727_v32, %v728_v51 }
 0x1b6   : > { %6116 = vpow2.f32 %v910_v31  ;;  %v738_v52 = vrot.slane %v737_v42, 2  ;;  %v742_v53 = vrot.slane %v6875_v43, 4  ;;  %v6882_v55 = vpop.f32.mrb[24].mxu0  ;;  %v984_v5 = vrot.slane %v983_v60, 2 }
 0x1b7   : > { %v559_v57 = vpop.f32.mrb[25].mxu0  ;;  %6118 = vpow2.f32 %v912_v40  ;;  %v981_v3 = vadd.f32 %v980_v59, %v979_v47  ;;  %v988_v6 = vrot.slane %v6879_v50, 4  ;;  %v734_v14 = vrot.slane %v733_v56, 1 }
 0x1b8   : > { %v739_v34 = vmax.f32 %v737_v42, %v738_v52  ;;  %v743_v61 = vmax.f32 %v6875_v43, %v742_v53  ;;  %v6887_v63 = vadd.f32 %v559_v57, %v6797_v24  ;;  %v985_v16 = vadd.f32 %v984_v5, %v983_v60 }
 0x1b9   : > { %6120 = vrcp.f32 %v981_v3  ;;  %v989_v31 = vadd.f32 %v6879_v50, %v988_v6  ;;  %v876_v32 = vsub.f32 %v6844_v49, %v729_v8  ;;  %v735_v47 = vmax.f32 %v733_v56, %v734_v14 }
 0x1ba   : > { %v748_v9 = vrot.slane %v6887_v63, 4  ;;  %v6891_v10 = vpop.f32.mrb[26].mxu0  ;;  %v740_v17 = vrot.slane %v739_v34, 1  ;;  %v744_v19 = vrot.slane %v743_v61, 2  ;;  %6122 = vpow2.f32 %v914_v2 }
 0x1bb   : > { %v6113_v11 = vpop.eup %6112  ;;  %v565_v15 = vpop.f32.mrb[27].mxu0  ;;  %v986_v7 = vrot.slane %v985_v16, 1  ;;  %v990_v42 = vrot.slane %v989_v31, 2  ;;  %v916_v59 = vmul.f32 1.442695, %v876_v32  ;;  %v877_v6 = vsub.f32 %v6855_v4, %v735_v47 }
 0x1bc   : > { %v749_v21 = vmax.f32 %v6887_v63, %v748_v9  ;;  %v6895_v25 = vadd.f32 %v565_v15, %v6797_v24  ;;  %v1188_v27 = vmul.f32 %v6113_v11, %v6829_v29  ;;  %v741_v48 = vmax.f32 %v739_v34, %v740_v17 }
 0x1bd   : > { %v987_v40 = vadd.f32 %v986_v7, %v985_v16  ;;  %v745_v29 = vmax.f32 %v743_v61, %v744_v19  ;;  %v991_v53 = vadd.f32 %v990_v42, %v989_v31 }
 0x1be   : > { %v754_v33 = vrot.slane %v6895_v25, 4  ;;  %v6901_v37 = vpop.f32.mrb[28].mxu0  ;;  %v750_v38 = vrot.slane %v749_v21, 2  ;;  %1220 = vxpose.xlu0.b32.start.end [1/1] (short) (narrow) %v1188_v27, 8 }
 0x1bf   : > { %v6115_v18 = vpop.eup %6114  ;;  %v571_v39 = vpop.f32.mrb[29].mxu0  ;;  %6124 = vrcp.f32 %v987_v40  ;;  %v992_v61 = vrot.slane %v991_v53, 1  ;;  %v746_v8 = vrot.slane %v745_v29, 1 }
 0x1c0   : > { %v6903_v45 = vpop.eup %6116  ;;  %v755_v51 = vmax.f32 %v6895_v25, %v754_v33  ;;  %v6907_v52 = vadd.f32 %v571_v39, %v6797_v24  ;;  %v1189_v49 = vmul.f32 %v6115_v18, %v6840_v46  ;;  %v751_v3 = vmax.f32 %v749_v21, %v750_v38 }
 0x1c1   : > { %v6910_v57 = vpop.eup %6118  ;;  %v994_v5 = vrot.slane %v6903_v45, 4  ;;  %v878_v46 = vsub.f32 %v6864_v22, %v741_v48  ;;  %v993_v15 = vadd.f32 %v992_v61, %v991_v53  ;;  %v918_v33 = vmul.f32 1.442695, %v877_v6 }
 0x1c2   : > { %v756_v60 = vrot.slane %v755_v51, 2  ;;  %v6912_v2 = vpop.f32.mrb[30].mxu0  ;;  %v760_v56 = vrot.slane %v6907_v52, 4  ;;  %1326 = vxpose.xlu0.b32.start.end [1/1] (short) (narrow) %v1189_v49, 8  ;;  %v1000_v17 = vrot.slane %v6910_v57, 4  ;;  %v752_v22 = vrot.slane %v751_v3, 1 }
 0x1c3   : > { %v577_v34 = vpop.f32.mrb[31].mxu0  ;;  %v6121_v11 = vpop.eup %6120  ;;  %v995_v16 = vadd.f32 %v6903_v45, %v994_v5  ;;  %6126 = vrcp.f32 %v993_v15  ;;  %v920_v39 = vmul.f32 1.442695, %v878_v46  ;;  %v747_v40 = vmax.f32 %v745_v29, %v746_v8 }
 0x1c4   : > { %v6919_v9 = vadd.f32 %v577_v34, %v6797_v24  ;;  %v761_v14 = vmax.f32 %v6907_v52, %v760_v56  ;;  %v757_v19 = vmax.f32 %v755_v51, %v756_v60  ;;  %v6927_v4 = vpop.eup %6122  ;;  %v1190_v31 = vmul.f32 %v6121_v11, %v6851_v62 }
 0x1c5   : > { %6128 = vpow2.f32 %v916_v59  ;;  %v996_v42 = vrot.slane %v995_v16, 2  ;;  %v1001_v47 = vadd.f32 %v6910_v57, %v1000_v17  ;;  %v1006_v53 = vrot.slane %v6927_v4, 4 }
 0x1c6   : > { %v766_v21 = vrot.slane %v6919_v9, 4  ;;  %v6925_v27 = vpop.f32.mrb[32].mxu0  ;;  %v762_v7 = vrot.slane %v761_v14, 2  ;;  %1431 = vxpose.xlu1.b32.start.end [1/1] (short) (narrow) %v1190_v31, 8  ;;  %v758_v48 = vrot.slane %v757_v19, 1  ;;  %v753_v60 = vmax.f32 %v751_v3, %v752_v22 }
 0x1c7   : > { %v583_v32 = vpop.f32.mrb[33].mxu0  ;;  %v997_v61 = vadd.f32 %v996_v42, %v995_v16  ;;  %v1002_v5 = vrot.slane %v1001_v47, 2  ;;  %6130 = vpow2.f32 %v918_v33  ;;  %v879_v17 = vsub.f32 %v6875_v43, %v747_v40 }
 0x1c8   : > { %v767_v18 = vmax.f32 %v6919_v9, %v766_v21  ;;  %v6932_v38 = vadd.f32 %v583_v32, %v6797_v24  ;;  %v763_v56 = vmax.f32 %v761_v14, %v762_v7  ;;  %6132 = vpow2.f32 %v920_v39 }
 0x1c9   : > { %v6125_v59 = vpop.eup %6124  ;;  %v998_v11 = vrot.slane %v997_v61, 1  ;;  %v1003_v15 = vadd.f32 %v1002_v5, %v1001_v47  ;;  %v759_v21 = vmax.f32 %v757_v19, %v758_v48  ;;  %v1007_v16 = vadd.f32 %v6927_v4, %v1006_v53 }
 0x1ca   : > { %v768_v51 = vrot.slane %v767_v18, 2  ;;  %v772_v49 = vrot.slane %v6932_v38, 4  ;;  %v6936_v62 = vpop.f32.mrb[34].mxu0  ;;  %v1191_v46 = vmul.f32 %v6125_v59, %v6868_v28  ;;  %v880_v22 = vsub.f32 %v6887_v63, %v753_v60 }
 0x1cb   : > { %v589_v34 = vpop.f32.mrb[35].mxu0  ;;  %v764_v7 = vrot.slane %v763_v56, 1  ;;  %v999_v32 = vadd.f32 %v998_v11, %v997_v61  ;;  %v1004_v43 = vrot.slane %v1003_v15, 1  ;;  %v1008_v42 = vrot.slane %v1007_v16, 2 }
 0x1cc   : > { %v769_v29 = vmax.f32 %v767_v18, %v768_v51  ;;  %v773_v6 = vmax.f32 %v6932_v38, %v772_v49  ;;  %v6942_v8 = vadd.f32 %v589_v34, %v6797_v24  ;;  %1536 = vxpose.xlu1.b32.start.end [1/1] (short) (narrow) %v1191_v46, 8  ;;  %v922_v48 = vmul.f32 1.442695, %v879_v17 }
 0x1cd   : > { %v6127_v19 = vpop.eup %6126  ;;  %6134 = vrcp.f32 %v999_v32  ;;  %v881_v63 = vsub.f32 %v6895_v25, %v759_v21  ;;  %v765_v59 = vmax.f32 %v763_v56, %v764_v7  ;;  %v1005_v5 = vadd.f32 %v1004_v43, %v1003_v15 }
 0x1ce   : > { %v774_v3 = vrot.slane %v773_v6, 2  ;;  %v6945_v14 = vpop.f32.mrb[36].mxu0  ;;  %v778_v28 = vrot.slane %v6942_v8, 4  ;;  %v770_v33 = vrot.slane %v769_v29, 1  ;;  %v1192_v51 = vmul.f32 %v6127_v19, %v6879_v50 }
 0x1cf   : > { %v595_v31 = vpop.f32.mrb[37].mxu0  ;;  %v6954_v47 = vpop.eup %6128  ;;  %6136 = vrcp.f32 %v1005_v5  ;;  %v1009_v50 = vadd.f32 %v1008_v42, %v1007_v16  ;;  %v926_v56 = vmul.f32 1.442695, %v881_v63 }
 0x1d0   : > { %v775_v18 = vmax.f32 %v773_v6, %v774_v3  ;;  %v6951_v39 = vadd.f32 %v595_v31, %v6797_v24  ;;  %v779_v40 = vmax.f32 %v6942_v8, %v778_v28  ;;  %v924_v6 = vmul.f32 1.442695, %v880_v22  ;;  %1641 = vxpose.xlu0.b32.start.end [1/1] (short) (narrow) %v1192_v51, 8 }
 0x1d1   : > { %v771_v46 = vmax.f32 %v769_v29, %v770_v33  ;;  %v1012_v21 = vrot.slane %v6954_v47, 4  ;;  %v6966_v3 = vpop.eup %6130  ;;  %6138 = vpow2.f32 %v922_v48  ;;  %v882_v28 = vsub.f32 %v6907_v52, %v765_v59 }
 0x1d2   : > { %v784_v49 = vrot.slane %v6951_v39, 4  ;;  %v6959_v53 = vpop.f32.mrb[38].mxu0  ;;  %v776_v60 = vrot.slane %v775_v18, 1  ;;  %v780_v34 = vrot.slane %v779_v40, 2  ;;  %v6971_v29 = vpop.eup %6132  ;;  %v1010_v33 = vrot.slane %v1009_v50, 1 }
 0x1d3   : > { %v601_v61 = vpop.f32.mrb[39].mxu0  ;;  %v1013_v16 = vadd.f32 %v6954_v47, %v1012_v21  ;;  %6140 = vpow2.f32 %v924_v6  ;;  %v883_v42 = vsub.f32 %v6919_v9, %v771_v46  ;;  %v1018_v51 = vrot.slane %v6966_v3, 4 }
 0x1d4   : > { %v785_v11 = vmax.f32 %v6951_v39, %v784_v49  ;;  %v6963_v17 = vadd.f32 %v601_v61, %v6797_v24  ;;  %v781_v25 = vmax.f32 %v779_v40, %v780_v34  ;;  %v777_v31 = vmax.f32 %v775_v18, %v776_v60 }
 0x1d5   : > { %v1011_v48 = vadd.f32 %v1010_v33, %v1009_v50  ;;  %v1014_v63 = vrot.slane %v1013_v16, 2  ;;  %6142 = vpow2.f32 %v926_v56  ;;  %v928_v34 = vmul.f32 1.442695, %v882_v28 }
 0x1d6   : > { %v786_v7 = vrot.slane %v785_v11, 2  ;;  %v790_v15 = vrot.slane %v6963_v17, 4  ;;  %v6969_v22 = vpop.f32.mrb[40].mxu0  ;;  %v782_v43 = vrot.slane %v781_v25, 1  ;;  %v884_v61 = vsub.f32 %v6932_v38, %v777_v31 }
 0x1d7   : > { %v607_v32 = vpop.f32.mrb[41].mxu0  ;;  %v6135_v60 = vpop.eup %6134  ;;  %6144 = vrcp.f32 %v1011_v48  ;;  %v1015_v6 = vadd.f32 %v1014_v63, %v1013_v16  ;;  %v930_v56 = vmul.f32 1.442695, %v883_v42 }
 0x1d8   : > { %v791_v19 = vmax.f32 %v6963_v17, %v790_v15  ;;  %v6977_v40 = vadd.f32 %v607_v32, %v6797_v24  ;;  %v787_v52 = vmax.f32 %v785_v11, %v786_v7  ;;  %v783_v21 = vmax.f32 %v781_v25, %v782_v43 }
 0x1d9   : > { %v1193_v9 = vmul.f32 %v6135_v60, %v6903_v45  ;;  %v1016_v7 = vrot.slane %v1015_v6, 1  ;;  %v1019_v15 = vadd.f32 %v6966_v3, %v1018_v51  ;;  %v1024_v25 = vrot.slane %v6971_v29, 4  ;;  %v6137_v33 = vpop.eup %6136 }
 0x1da   : > { %v792_v18 = vrot.slane %v791_v19, 2  ;;  %v796_v49 = vrot.slane %v6977_v40, 4  ;;  %v6982_v59 = vpop.f32.mrb[42].mxu0  ;;  %v788_v32 = vrot.slane %v787_v52, 1  ;;  %6146 = vpow2.f32 %v928_v34 }
 0x1db   : > { %v613_v5 = vpop.f32.mrb[43].mxu0  ;;  %1746 = vxpose.xlu1.b32.start.end [1/1] (short) (narrow) %v1193_v9, 8  ;;  %v1017_v16 = vadd.f32 %v1016_v7, %v1015_v6  ;;  %v932_v42 = vmul.f32 1.442695, %v884_v61  ;;  %v885_v48 = vsub.f32 %v6942_v8, %v783_v21  ;;  %v1194_v63 = vmul.f32 %v6137_v33, %v6910_v57 }
 0x1dc   : > { %v793_v46 = vmax.f32 %v791_v19, %v792_v18  ;;  %v797_v50 = vmax.f32 %v6977_v40, %v796_v49  ;;  %v6988_v11 = vadd.f32 %v613_v5, %v6797_v24  ;;  %v6995_v19 = vpop.eup %6138  ;;  %v1020_v60 = vrot.slane %v1019_v15, 2 }
 0x1dd   : > { %6148 = vrcp.f32 %v1017_v16  ;;  %v7003_v34 = vpop.eup %6140  ;;  %v789_v5 = vmax.f32 %v787_v52, %v788_v32  ;;  %1851 = vxpose.xlu0.b32.start.end [1/1] (short) (narrow) %v1194_v63, 8  ;;  %v1025_v8 = vadd.f32 %v6971_v29, %v1024_v25  ;;  %v934_v33 = vmul.f32 1.442695, %v885_v48 }
 0x1de   : > { %v794_v28 = vrot.slane %v793_v46, 1  ;;  %v798_v38 = vrot.slane %v797_v50, 2  ;;  %v6991_v31 = vpop.f32.mrb[44].mxu0  ;;  %v802_v45 = vrot.slane %v6988_v11, 4  ;;  %6150 = vpow2.f32 %v930_v56 }
 0x1df   : > { %v619_v43 = vpop.f32.mrb[45].mxu0  ;;  %6152 = vpow2.f32 %v932_v42  ;;  %v1026_v52 = vrot.slane %v1025_v8, 2  ;;  %v1030_v25 = vrot.slane %v6995_v19, 4  ;;  %v886_v16 = vsub.f32 %v6951_v39, %v789_v5 }
 0x1e0   : > { %v799_v51 = vmax.f32 %v797_v50, %v798_v38  ;;  %v803_v18 = vmax.f32 %v6988_v11, %v802_v45  ;;  %v7001_v49 = vadd.f32 %v619_v43, %v6797_v24  ;;  %v795_v6 = vmax.f32 %v793_v46, %v794_v28  ;;  %v7009_v38 = vpop.eup %6142 }
 0x1e1   : > { %v1021_v50 = vadd.f32 %v1020_v60, %v1019_v15  ;;  %v6145_v46 = vpop.eup %6144  ;;  %6154 = vpow2.f32 %v934_v33 }
 0x1e2   : > { %v7005_v9 = vpop.f32.mrb[46].mxu0  ;;  %v800_v61 = vrot.slane %v799_v51, 1  ;;  %v804_v57 = vrot.slane %v803_v18, 2  ;;  %v808_v21 = vrot.slane %v7001_v49, 4  ;;  %v887_v15 = vsub.f32 %v6963_v17, %v795_v6 }
 0x1e3   : > { %v625_v7 = vpop.f32.mrb[47].mxu0  ;;  %v1022_v28 = vrot.slane %v1021_v50, 1  ;;  %v1195_v43 = vmul.f32 %v6145_v46, %v6927_v4  ;;  %v1031_v6 = vadd.f32 %v6995_v19, %v1030_v25 }
 0x1e4   : > { %v7012_v45 = vadd.f32 %v625_v7, %v6797_v24  ;;  %v805_v56 = vmax.f32 %v803_v18, %v804_v57  ;;  %v809_v32 = vmax.f32 %v7001_v49, %v808_v21  ;;  %v801_v63 = vmax.f32 %v799_v51, %v800_v61  ;;  %v7026_v17 = vpop.eup %6146 }
 0x1e5   : > { %v1023_v0 = vadd.f32 %v1022_v28, %v1021_v50  ;;  %1956 = vxpose.xlu1.b32.start.end [1/1] (short) (narrow) %v1195_v43, 8  ;;  %v1027_v21 = vadd.f32 %v1026_v52, %v1025_v8  ;;  %v936_v51 = vmul.f32 1.442695, %v886_v16  ;;  %v938_v43 = vmul.f32 1.442695, %v887_v15 }
 0x1e6   : > { %v814_v42 = vrot.slane %v7012_v45, 4  ;;  %v7020_v48 = vpop.f32.mrb[48].mxu0  ;;  %v806_v60 = vrot.slane %v805_v56, 1  ;;  %v810_v7 = vrot.slane %v809_v32, 2  ;;  %v888_v8 = vsub.f32 %v6977_v40, %v801_v63 }
 0x1e7   : > { %7733 = vst [vmem:[#allocation17_spill] sm:$0xff] %v7020_v48  ;;  %v631_v18 = vpop.f32.mrb[49].mxu0  ;;  %6156 = vrcp.f32 %v1023_v0  ;;  %v1028_v46 = vrot.slane %v1027_v21, 1  ;;  %v6149_v28 = vpop.eup %6148 }
 0x1e8   : > { %v815_v57 = vmax.f32 %v7012_v45, %v814_v42  ;;  %v7024_v39 = vadd.f32 %v631_v18, %v6797_v24  ;;  %v807_v4 = vmax.f32 %v805_v56, %v806_v60  ;;  %v811_v5 = vmax.f32 %v809_v32, %v810_v7  ;;  %v7033_v20 = vpop.eup %6150 }
 0x1e9   : > { %v1032_v42 = vrot.slane %v1031_v6, 2  ;;  %v1196_v0 = vmul.f32 %v6149_v28, %v6954_v47  ;;  %v1029_v32 = vadd.f32 %v1028_v46, %v1027_v21  ;;  %v7041_v15 = vpop.eup %6152  ;;  %v1036_v47 = vrot.slane %v7003_v34, 4 }
 0x1ea   : > { %v816_v61 = vrot.slane %v815_v57, 2  ;;  %v820_v50 = vrot.slane %v7024_v39, 4  ;;  %v7030_v33 = vpop.f32.mrb[50].mxu0  ;;  %v812_v52 = vrot.slane %v811_v5, 1  ;;  %v889_v16 = vsub.f32 %v6988_v11, %v807_v4 }
 0x1eb   : > { %7734 = vst [vmem:[#allocation18_spill] sm:$0xff] %v7030_v33  ;;  %v637_v18 = vpop.f32.mrb[51].mxu0  ;;  %v1033_v7 = vadd.f32 %v1032_v42, %v1031_v6  ;;  %2061 = vxpose.xlu0.b32.start.end [1/1] (short) (narrow) %v1196_v0, 8  ;;  %6158 = vrcp.f32 %v1029_v32  ;;  %v7052_v42 = vpop.eup %6154 }
 0x1ec   : > { %v817_v56 = vmax.f32 %v815_v57, %v816_v61  ;;  %v821_v25 = vmax.f32 %v7024_v39, %v820_v50  ;;  %v813_v60 = vmax.f32 %v811_v5, %v812_v52  ;;  %v7039_v33 = vadd.f32 %v637_v18, %v6797_v24 }
 0x1ed   : > { %6160 = vpow2.f32 %v936_v51  ;;  %v940_v57 = vmul.f32 1.442695, %v888_v8  ;;  %v1034_v21 = vrot.slane %v1033_v7, 1  ;;  %v1037_v61 = vadd.f32 %v7003_v34, %v1036_v47 }
 0x1ee   : > { %v818_v40 = vrot.slane %v817_v56, 1  ;;  %v822_v63 = vrot.slane %v821_v25, 2  ;;  %v7043_v48 = vpop.f32.mrb[52].mxu0  ;;  %v826_v11 = vrot.slane %v7039_v33, 4  ;;  %6162 = vpow2.f32 %v938_v43 }
 0x1ef   : > { %7735 = vst [vmem:[#allocation19_spill] sm:$0xff] %v7043_v48  ;;  %v643_v4 = vpop.f32.mrb[53].mxu0  ;;  %v942_v46 = vmul.f32 1.442695, %v889_v16  ;;  %v1035_v50 = vadd.f32 %v1034_v21, %v1033_v7  ;;  %v890_v51 = vsub.f32 %v7001_v49, %v813_v60  ;;  %v1038_v18 = vrot.slane %v1037_v61, 2 }
 0x1f0   : > { %v819_v5 = vmax.f32 %v817_v56, %v818_v40  ;;  %v823_v6 = vmax.f32 %v821_v25, %v822_v63  ;;  %v827_v28 = vmax.f32 %v7039_v33, %v826_v11  ;;  %v7050_v52 = vadd.f32 %v643_v4, %v6797_v24 }
 0x1f1   : > { %v1042_v43 = vrot.slane %v7009_v38, 4  ;;  %v6157_v56 = vpop.eup %6156  ;;  %6164 = vpow2.f32 %v940_v57  ;;  %v1039_v49 = vadd.f32 %v1038_v18, %v1037_v61  ;;  %v944_v11 = vmul.f32 1.442695, %v890_v51 }
 0x1f2   : > { %v824_v8 = vrot.slane %v823_v6, 1  ;;  %v7055_v0 = vpop.f32.mrb[54].mxu0  ;;  %v828_v32 = vrot.slane %v827_v28, 2  ;;  %v832_v25 = vrot.slane %v7050_v52, 4  ;;  %v1197_v7 = vmul.f32 %v6157_v56, %v6966_v3 }
 0x1f3   : > { %7736 = vst [vmem:[#allocation20_spill] sm:$0xff] %v7055_v0  ;;  %v649_v16 = vpop.f32.mrb[55].mxu0  ;;  %v891_v40 = vsub.f32 %v7012_v45, %v819_v5  ;;  %6166 = vrcp.f32 %v1035_v50  ;;  %v1043_v21 = vadd.f32 %v7009_v38, %v1042_v43  ;;  %v1048_v3 = vrot.slane %v7026_v17, 4 }
 0x1f4   : > { %v825_v63 = vmax.f32 %v823_v6, %v824_v8  ;;  %v829_v47 = vmax.f32 %v827_v28, %v828_v32  ;;  %v833_v60 = vmax.f32 %v7050_v52, %v832_v25  ;;  %6168 = vpow2.f32 %v942_v46  ;;  %2166 = vxpose.xlu1.b32.start.end [1/1] (short) (narrow) %v1197_v7, 8 }
 0x1f5   : > { %v7064_v57 = vadd.f32 %v649_v16, %v6797_v24  ;;  %v1040_v45 = vrot.slane %v1039_v49, 1  ;;  %v1044_v6 = vrot.slane %v1043_v21, 2  ;;  %v6159_v61 = vpop.eup %6158  ;;  %v946_v28 = vmul.f32 1.442695, %v891_v40 }
 0x1f6   : > { %v7066_v4 = vpop.f32.mrb[56].mxu0  ;;  %v830_v56 = vrot.slane %v829_v47, 1  ;;  %v834_v5 = vrot.slane %v833_v60, 2  ;;  %v892_v8 = vsub.f32 %v7024_v39, %v825_v63  ;;  %v1049_v51 = vadd.f32 %v7026_v17, %v1048_v3 }
 0x1f7   : > { %7737 = vst [vmem:[#allocation21_spill] sm:$0xff] %v7066_v4  ;;  %v655_v50 = vpop.f32.mrb[57].mxu0  ;;  %v838_v46 = vrot.slane %v7064_v57, 4  ;;  %v7072_v18 = vpop.eup %6160  ;;  %v1198_v43 = vmul.f32 %v6159_v61, %v6971_v29  ;;  %v1041_v25 = vadd.f32 %v1040_v45, %v1039_v49  ;;  %6170 = vpow2.f32 %v944_v11 }
 0x1f8   : > { %v831_v32 = vmax.f32 %v829_v47, %v830_v56  ;;  %v835_v16 = vmax.f32 %v833_v60, %v834_v5  ;;  %v7075_v7 = vpop.eup %6162  ;;  %v1045_v4 = vadd.f32 %v1044_v6, %v1043_v21  ;;  %v1050_v40 = vrot.slane %v1049_v51, 2 }
 0x1f9   : > { %v839_v0 = vmax.f32 %v7064_v57, %v838_v46  ;;  %2271 = vxpose.xlu0.b32.start.end [1/1] (short) (narrow) %v1198_v43, 8  ;;  %6172 = vrcp.f32 %v1041_v25  ;;  %v7082_v3 = vadd.f32 %v655_v50, %v6797_v24  ;;  %v948_v21 = vmul.f32 1.442695, %v892_v8 }
 0x1fa   : > { %v7078_v48 = vpop.f32.mrb[58].mxu0  ;;  %v893_v39 = vsub.f32 %v7039_v33, %v831_v32  ;;  %v836_v63 = vrot.slane %v835_v16, 1  ;;  %6174 = vpow2.f32 %v946_v28  ;;  %v1046_v47 = vrot.slane %v1045_v4, 1 }
 0x1fb   : > { %7738 = vst [vmem:[#allocation22_spill] sm:$0xff] %v7078_v48  ;;  %v661_v29 = vpop.f32.mrb[59].mxu0  ;;  %v840_v49 = vrot.slane %v839_v0, 2  ;;  %v1051_v60 = vadd.f32 %v1050_v40, %v1049_v51  ;;  %v7084_v11 = vpop.eup %6164  ;;  %v844_v45 = vrot.slane %v7082_v3, 4  ;;  %v1054_v5 = vrot.slane %v7033_v20, 4 }
 0x1fc   : > { %v837_v56 = vmax.f32 %v835_v16, %v836_v63  ;;  %v1047_v33 = vadd.f32 %v1046_v47, %v1045_v4  ;;  %v7089_v50 = vadd.f32 %v661_v29, %v6797_v24  ;;  %v950_v51 = vmul.f32 1.442695, %v893_v39 }
 0x1fd   : > { %v6167_v6 = vpop.eup %6166  ;;  %v841_v61 = vmax.f32 %v839_v0, %v840_v49  ;;  %v1052_v46 = vrot.slane %v1051_v60, 1  ;;  %v845_v8 = vmax.f32 %v7082_v3, %v844_v45  ;;  %v1055_v0 = vadd.f32 %v7033_v20, %v1054_v5 }
 0x1fe   : > { %v7091_v43 = vpop.f32.mrb[60].mxu0  ;;  %v1199_v28 = vmul.f32 %v6167_v6, %v6995_v19  ;;  %v894_v32 = vsub.f32 %v7050_v52, %v837_v56  ;;  %v7096_v16 = vpop.eup %6168  ;;  %6176 = vrcp.f32 %v1047_v33  ;;  %v850_v47 = vrot.slane %v7089_v50, 4 }
 0x1ff   : > { %7739 = vst [vmem:[#allocation23_spill] sm:$0xff] %v7091_v43  ;;  %v667_v25 = vpop.f32.mrb[61].mxu0  ;;  %v842_v40 = vrot.slane %v841_v61, 1  ;;  %v1053_v4 = vadd.f32 %v1052_v46, %v1051_v60  ;;  %6178 = vpow2.f32 %v948_v21  ;;  %v846_v29 = vrot.slane %v845_v8, 2 }
 0x200   : > { %2376 = vxpose.xlu1.b32.start.end [1/1] (short) (narrow) %v1199_v28, 8  ;;  %v952_v63 = vmul.f32 1.442695, %v894_v32  ;;  %v1056_v39 = vrot.slane %v1055_v0, 2  ;;  %v1060_v52 = vrot.slane %v7041_v15, 4  ;;  %v851_v45 = vmax.f32 %v7089_v50, %v850_v47 }
 0x201   : > { %v843_v19 = vmax.f32 %v841_v61, %v842_v40  ;;  %6180 = vrcp.f32 %v1053_v4  ;;  %v847_v56 = vmax.f32 %v845_v8, %v846_v29  ;;  %v7105_v60 = vadd.f32 %v667_v25, %v6797_v24  ;;  %v7107_v5 = vpop.eup %6170 }
 0x202   : > { %v7101_v49 = vpop.f32.mrb[62].mxu0  ;;  %6182 = vpow2.f32 %v950_v51  ;;  %v1057_v33 = vadd.f32 %v1056_v39, %v1055_v0  ;;  %v1061_v61 = vadd.f32 %v7041_v15, %v1060_v52  ;;  %v852_v32 = vrot.slane %v851_v45, 2 }
 0x203   : > { %7740 = vst [vmem:[#allocation24_spill] sm:$0xff] %v7101_v49  ;;  %v673_v21 = vpop.f32.mrb[63].mxu0  ;;  %6184 = vpow2.f32 %v952_v63  ;;  %v895_v6 = vsub.f32 %v7064_v57, %v843_v19  ;;  %v6173_v46 = vpop.eup %6172  ;;  %v848_v28 = vrot.slane %v847_v56, 1  ;;  %v856_v51 = vrot.slane %v7105_v60, 4 }
 0x204   : > { %v1066_v8 = vrot.slane %v7052_v42, 4  ;;  %v7113_v40 = vpop.eup %6174  ;;  %v1200_v25 = vmul.f32 %v6173_v46, %v7003_v34  ;;  %v1058_v29 = vrot.slane %v1057_v33, 1  ;;  %v1062_v47 = vrot.slane %v1061_v61, 2 }
 0x205   : > { %v954_v4 = vmul.f32 1.442695, %v895_v6  ;;  %v849_v63 = vmax.f32 %v847_v56, %v848_v28  ;;  %v853_v49 = vmax.f32 %v851_v45, %v852_v32  ;;  %v857_v57 = vmax.f32 %v7105_v60, %v856_v51 }
 0x206   : > { %v1067_v0 = vadd.f32 %v7052_v42, %v1066_v8  ;;  %2481 = vxpose.xlu0.b32.start.end [1/1] (short) (narrow) %v1200_v25, 8  ;;  %v1059_v19 = vadd.f32 %v1058_v29, %v1057_v33  ;;  %v1063_v39 = vadd.f32 %v1062_v47, %v1061_v61  ;;  %v7119_v52 = vadd.f32 %v673_v21, %v6797_v24 }
 0x207   : > { %6186 = vpow2.f32 %v954_v4  ;;  %v896_v43 = vsub.f32 %v7082_v3, %v849_v63  ;;  %v854_v48 = vrot.slane %v853_v49, 1  ;;  %v858_v34 = vrot.slane %v857_v57, 2 }
 0x208   : > { %v1068_v6 = vrot.slane %v1067_v0, 2  ;;  %v6177_v46 = vpop.eup %6176  ;;  %6188 = vrcp.f32 %v1059_v19  ;;  %v1064_v56 = vrot.slane %v1063_v39, 1  ;;  %v862_v45 = vrot.slane %v7119_v52, 4 }
 0x209   : > { %v1072_v28 = vrot.slane %v7072_v18, 4  ;;  %v7124_v32 = vpop.eup %6178  ;;  %v1201_v33 = vmul.f32 %v6177_v46, %v7009_v38  ;;  %v956_v61 = vmul.f32 1.442695, %v896_v43  ;;  %v855_v51 = vmax.f32 %v853_v49, %v854_v48 }
 0x20a   : > { %v859_v24 = vmax.f32 %v857_v57, %v858_v34  ;;  %v1065_v8 = vadd.f32 %v1064_v56, %v1063_v39  ;;  %v1069_v3 = vadd.f32 %v1068_v6, %v1067_v0  ;;  %v863_v25 = vmax.f32 %v7119_v52, %v862_v45 }
 0x20b   : > { %v6181_v21 = vpop.eup %6180  ;;  %v1073_v4 = vadd.f32 %v7072_v18, %v1072_v28  ;;  %2586 = vxpose.xlu1.b32.start.end [1/1] (short) (narrow) %v1201_v33, 8  ;;  %6190 = vpow2.f32 %v956_v61  ;;  %v897_v63 = vsub.f32 %v7089_v50, %v855_v51  ;;  %v1078_v39 = vrot.slane %v7075_v7, 4 }
 0x20c   : > { %v7129_v29 = vpop.eup %6182  ;;  %v1202_v47 = vmul.f32 %v6181_v21, %v7026_v17  ;;  %v860_v19 = vrot.slane %v859_v24, 1  ;;  %6192 = vrcp.f32 %v1065_v8  ;;  %v1070_v48 = vrot.slane %v1069_v3, 1 }
 0x20d   : > { %v7133_v38 = vpop.eup %6184  ;;  %v864_v43 = vrot.slane %v863_v25, 2  ;;  %v1074_v49 = vrot.slane %v1073_v4, 2  ;;  %v958_v57 = vmul.f32 1.442695, %v897_v63  ;;  %v1084_v34 = vrot.slane %v7084_v11, 4 }
 0x20e   : > { %2691 = vxpose.xlu0.b32.start.end [1/1] (short) (narrow) %v1202_v47, 8  ;;  %v861_v0 = vmax.f32 %v859_v24, %v860_v19  ;;  %v1071_v6 = vadd.f32 %v1070_v48, %v1069_v3  ;;  %v1090_v56 = vrot.slane %v7096_v16, 4  ;;  %v1079_v45 = vadd.f32 %v7075_v7, %v1078_v39 }
 0x20f   : > { %v865_v46 = vmax.f32 %v863_v25, %v864_v43  ;;  %v1075_v17 = vadd.f32 %v1074_v49, %v1073_v4  ;;  %6194 = vpow2.f32 %v958_v57  ;;  %v1085_v28 = vadd.f32 %v7084_v11, %v1084_v34 }
 0x210   : > { %v898_v50 = vsub.f32 %v7105_v60, %v861_v0  ;;  %6196 = vrcp.f32 %v1071_v6  ;;  %v1091_v24 = vadd.f32 %v7096_v16, %v1090_v56  ;;  %v1080_v8 = vrot.slane %v1079_v45, 2 }
 0x211   : > { %v7141_v33 = vpop.eup %6186  ;;  %v866_v61 = vrot.slane %v865_v46, 1  ;;  %v1076_v51 = vrot.slane %v1075_v17, 1  ;;  %v1086_v3 = vrot.slane %v1085_v28, 2  ;;  %v1096_v25 = vrot.slane %v7107_v5, 4 }
 0x212   : > { %v960_v21 = vmul.f32 1.442695, %v898_v50  ;;  %v6189_v4 = vpop.eup %6188  ;;  %v1092_v60 = vrot.slane %v1091_v24, 2  ;;  %v1102_v19 = vrot.slane %v7113_v40, 4  ;;  %v1081_v43 = vadd.f32 %v1080_v8, %v1079_v45 }
 0x213   : > { %v867_v47 = vmax.f32 %v865_v46, %v866_v61  ;;  %v1077_v63 = vadd.f32 %v1076_v51, %v1075_v17  ;;  %v1203_v48 = vmul.f32 %v6189_v4, %v7033_v20  ;;  %v1087_v49 = vadd.f32 %v1086_v3, %v1085_v28 }
 0x214   : > { %6198 = vpow2.f32 %v960_v21  ;;  %v1093_v0 = vadd.f32 %v1092_v60, %v1091_v24  ;;  %v1097_v39 = vadd.f32 %v7107_v5, %v1096_v25  ;;  %v1082_v6 = vrot.slane %v1081_v43, 1 }
 0x215   : > { %v899_v57 = vsub.f32 %v7119_v52, %v867_v47  ;;  %6200 = vrcp.f32 %v1077_v63  ;;  %v7149_v34 = vpop.eup %6190  ;;  %2796 = vxpose.xlu1.b32.start.end [1/1] (short) (narrow) %v1203_v48, 8  ;;  %v1088_v46 = vrot.slane %v1087_v49, 1  ;;  %v1103_v17 = vadd.f32 %v7113_v40, %v1102_v19 }
 0x216   : > { %v1108_v56 = vrot.slane %v7124_v32, 4  ;;  %v6193_v50 = vpop.eup %6192  ;;  %v1094_v61 = vrot.slane %v1093_v0, 1  ;;  %v1098_v45 = vrot.slane %v1097_v39, 2  ;;  %v1114_v28 = vrot.slane %v7129_v29, 4 }
 0x217   : > { %v962_v20 = vmul.f32 1.442695, %v899_v57  ;;  %v1204_v52 = vmul.f32 %v6193_v50, %v7041_v15  ;;  %v1083_v51 = vadd.f32 %v1082_v6, %v1081_v43  ;;  %v1089_v24 = vadd.f32 %v1088_v46, %v1087_v49 }
 0x218   : > { %v1104_v21 = vrot.slane %v1103_v17, 2  ;;  %v1095_v8 = vadd.f32 %v1094_v61, %v1093_v0  ;;  %v1099_v3 = vadd.f32 %v1098_v45, %v1097_v39  ;;  %v1109_v25 = vadd.f32 %v7124_v32, %v1108_v56 }
 0x219   : > { %6202 = vpow2.f32 %v962_v20  ;;  %v7156_v4 = vpop.eup %6194  ;;  %2901 = vxpose.xlu0.b32.start.end [1/1] (short) (narrow) %v1204_v52, 8  ;;  %v1115_v63 = vadd.f32 %v7129_v29, %v1114_v28  ;;  %v1120_v60 = vrot.slane %v7133_v38, 4  ;;  %v1126_v43 = vrot.slane %v7141_v33, 4 }
 0x21a   : > { %6204 = vrcp.f32 %v1083_v51  ;;  %v1105_v47 = vadd.f32 %v1104_v21, %v1103_v17  ;;  %v6197_v19 = vpop.eup %6196  ;;  %v1100_v15 = vrot.slane %v1099_v3, 1  ;;  %v1110_v48 = vrot.slane %v1109_v25, 2 }
 0x21b   : > { %6206 = vrcp.f32 %v1089_v24  ;;  %v1205_v49 = vmul.f32 %v6197_v19, %v7052_v42  ;;  %v1116_v0 = vrot.slane %v1115_v63, 2  ;;  %v1121_v46 = vadd.f32 %v7133_v38, %v1120_v60 }
 0x21c   : > { %6208 = vrcp.f32 %v1095_v8  ;;  %v1106_v57 = vrot.slane %v1105_v47, 1  ;;  %v1101_v39 = vadd.f32 %v1100_v15, %v1099_v3  ;;  %v1111_v6 = vadd.f32 %v1110_v48, %v1109_v25 }
 0x21d   : > { %v1127_v17 = vadd.f32 %v7141_v33, %v1126_v43  ;;  %3006 = vxpose.xlu1.b32.start.end [1/1] (short) (narrow) %v1205_v49, 8  ;;  %v1117_v20 = vadd.f32 %v1116_v0, %v1115_v63  ;;  %v1132_v61 = vrot.slane %v7149_v34, 4  ;;  %v1138_v45 = vrot.slane %v7156_v4, 4 }
 0x21e   : > { %v7164_v56 = vpop.eup %6198  ;;  %v1107_v50 = vadd.f32 %v1106_v57, %v1105_v47  ;;  %6210 = vrcp.f32 %v1101_v39  ;;  %v1112_v42 = vrot.slane %v1111_v6, 1  ;;  %v1122_v52 = vrot.slane %v1121_v46, 2 }
 0x21f   : > { %v6201_v28 = vpop.eup %6200  ;;  %v1128_v51 = vrot.slane %v1127_v17, 2  ;;  %v1118_v21 = vrot.slane %v1117_v20, 1  ;;  %v1133_v8 = vadd.f32 %v7149_v34, %v1132_v61  ;;  %v1139_v47 = vadd.f32 %v7156_v4, %v1138_v45 }
 0x220   : > { %v1206_v24 = vmul.f32 %v6201_v28, %v7072_v18  ;;  %6212 = vrcp.f32 %v1107_v50  ;;  %v1113_v3 = vadd.f32 %v1112_v42, %v1111_v6  ;;  %v1123_v25 = vadd.f32 %v1122_v52, %v1121_v46 }
 0x221   : > { %v1129_v60 = vadd.f32 %v1128_v51, %v1127_v17  ;;  %v1119_v63 = vadd.f32 %v1118_v21, %v1117_v20  ;;  %v1134_v19 = vrot.slane %v1133_v8, 2  ;;  %v1144_v15 = vrot.slane %v7164_v56, 4 }
 0x222   : > { %3111 = vxpose.xlu0.b32.start.end [1/1] (short) (narrow) %v1206_v24, 8  ;;  %6214 = vrcp.f32 %v1113_v3  ;;  %v1124_v43 = vrot.slane %v1123_v25, 1  ;;  %v1140_v18 = vrot.slane %v1139_v47, 2  ;;  %v7741_v57 = vmov 0.0  }
 0x223   : > { %v7172_v48 = vpop.eup %6202  ;;  %v1130_v49 = vrot.slane %v1129_v60, 1  ;;  %5603 = vmatprep.mubr.msk.f32.mxu1 %vm6461_vm0, %v7741_v57  ;;  %6216 = vrcp.f32 %v1119_v63  ;;  %v1135_v39 = vadd.f32 %v1134_v19, %v1133_v8  ;;  %v1145_v6 = vadd.f32 %v7164_v56, %v1144_v15 }
 0x224   : > { %v6205_v0 = vpop.eup %6204  ;;  %v1150_v46 = vrot.slane %v7172_v48, 4  ;;  %v1125_v20 = vadd.f32 %v1124_v43, %v1123_v25  ;;  %v1141_v45 = vadd.f32 %v1140_v18, %v1139_v47 }
 0x225   : > { %v6207_v17 = vpop.eup %6206  ;;  %v1207_v50 = vmul.f32 %v6205_v0, %v7075_v7  ;;  %v1131_v61 = vadd.f32 %v1130_v49, %v1129_v60  ;;  %v1136_v52 = vrot.slane %v1135_v39, 1  ;;  %v1146_v51 = vrot.slane %v1145_v6, 2 }
 0x226   : > { %v6209_v28 = vpop.eup %6208  ;;  %v1208_v42 = vmul.f32 %v6207_v17, %v7084_v11  ;;  %v1151_v24 = vadd.f32 %v7172_v48, %v1150_v46  ;;  %6218 = vrcp.f32 %v1125_v20  ;;  %v1142_v8 = vrot.slane %v1141_v45, 1 }
 0x227   : > { %3216 = vxpose.xlu1.b32.start.end [1/1] (short) (narrow) %v1207_v50, 8  ;;  %v1209_v21 = vmul.f32 %v6209_v28, %v7096_v16  ;;  %6220 = vrcp.f32 %v1131_v61  ;;  %v1137_v3 = vadd.f32 %v1136_v52, %v1135_v39  ;;  %v1147_v63 = vadd.f32 %v1146_v51, %v1145_v6 }
 0x228   : > { %3321 = vxpose.xlu0.b32.start.end [1/1] (short) (narrow) %v1208_v42, 8  ;;  %v1152_v7 = vrot.slane %v1151_v24, 2  ;;  %v6211_v25 = vpop.eup %6210  ;;  %v1143_v60 = vadd.f32 %v1142_v8, %v1141_v45 }
 0x229   : > { %v1210_v19 = vmul.f32 %v6211_v25, %v7107_v5  ;;  %6222 = vrcp.f32 %v1137_v3  ;;  %v1148_v11 = vrot.slane %v1147_v63, 1 }
 0x22a   : > { %v6213_v47 = vpop.eup %6212  ;;  %v1153_v15 = vadd.f32 %v1152_v7, %v1151_v24  ;;  %6224 = vrcp.f32 %v1143_v60 }
 0x22b   : > { %3426 = vxpose.xlu1.b32.start.end [1/1] (short) (narrow) %v1209_v21, 8  ;;  %v1211_v43 = vmul.f32 %v6213_v47, %v7113_v40  ;;  %v1149_v16 = vadd.f32 %v1148_v11, %v1147_v63 }
 0x22c   : > { %3531 = vxpose.xlu0.b32.start.end [1/1] (short) (narrow) %v1210_v19, 8  ;;  %v1154_v49 = vrot.slane %v1153_v15, 1  ;;  %v6215_v18 = vpop.eup %6214 }
 0x22d   : > { %v6217_v0 = vpop.eup %6216  ;;  %v1212_v39 = vmul.f32 %v6215_v18, %v7124_v32  ;;  %6226 = vrcp.f32 %v1149_v16 }
 0x22e   : > { %v1155_v6 = vadd.f32 %v1154_v49, %v1153_v15  ;;  %v1213_v46 = vmul.f32 %v6217_v0, %v7129_v29 }
 0x22f   : > { %3636 = vxpose.xlu1.b32.start.end [1/1] (short) (narrow) %v1211_v43, 8 }
 0x230   : > { %3741 = vxpose.xlu0.b32.start.end [1/1] (short) (narrow) %v1212_v39, 8  ;;  %6228 = vrcp.f32 %v1155_v6  ;;  %v6219_v5 = vpop.eup %6218 }
 0x231   : > { %v6221_v17 = vpop.eup %6220  ;;  %v1214_v50 = vmul.f32 %v6219_v5, %v7133_v38  ;;  %v492_v38 = vadd.f32 %v6801_v30, %v6795_v23  ;;  %v504_v30 = vadd.f32 %v6808_v44, %v6795_v23  ;;  %v516_v44 = vadd.f32 %v6814_v1, %v6795_v23 }
 0x232   : > { %v1215_v40 = vmul.f32 %v6221_v17, %v7141_v33  ;;  %v528_v1 = vadd.f32 %v6827_v26, %v6795_v23  ;;  %v540_v26 = vadd.f32 %v6848_v58, %v6795_v23  ;;  %v552_v58 = vadd.f32 %v6871_v35, %v6795_v23 }
 0x233   : > { %3846 = vxpose.xlu1.b32.start.end [1/1] (short) (narrow) %v1213_v46, 8  ;;  %v6223_v20 = vpop.eup %6222  ;;  %v564_v35 = vadd.f32 %v6891_v10, %v6795_v23  ;;  %v576_v10 = vadd.f32 %v6912_v2, %v6795_v23  ;;  %v588_v2 = vadd.f32 %v6936_v62, %v6795_v23  ;;  %v600_v62 = vadd.f32 %v6959_v53, %v6795_v23 }
 0x234   : > { %3951 = vxpose.xlu0.b32.start.end [1/1] (short) (narrow) %v1214_v50, 8  ;;  %v6225_v61 = vpop.eup %6224  ;;  %v1216_v45 = vmul.f32 %v6223_v20, %v7149_v34  ;;  %v498_v34 = vadd.f32 %v6805_v36, %v6795_v23  ;;  %v510_v36 = vadd.f32 %v6811_v54, %v6795_v23  ;;  %v522_v54 = vadd.f32 %v6820_v12, %v6795_v23 }
 0x235   : > { %v1217_v32 = vmul.f32 %v6225_v61, %v7156_v4  ;;  %v534_v12 = vadd.f32 %v6837_v41, %v6795_v23  ;;  %v546_v41 = vadd.f32 %v6859_v13, %v6795_v23  ;;  %v558_v13 = vadd.f32 %v6882_v55, %v6795_v23 }
 0x236   : > { %v570_v55 = vadd.f32 %v6901_v37, %v6795_v23  ;;  %v582_v37 = vadd.f32 %v6925_v27, %v6795_v23  ;;  %v594_v27 = vadd.f32 %v6945_v14, %v6795_v23  ;;  %v606_v14 = vadd.f32 %v6969_v22, %v6795_v23 }
 0x237   : > { %4056 = vxpose.xlu1.b32.start.end [1/1] (short) (narrow) %v1215_v40, 8  ;;  %v6227_v28 = vpop.eup %6226  ;;  %v612_v53 = vadd.f32 %v6982_v59, %v6795_v23  ;;  %v618_v22 = vadd.f32 %v6991_v31, %v6795_v23  ;;  %v624_v59 = vadd.f32 %v7005_v9, %v6795_v23  ;;  %v7742_v31 = vld [vmem:[#allocation17_spill] sm:$0xff]  ;;  %v7743_v9 = vld [vmem:[#allocation18_spill] sm:$0xff]  ;;  %v7744_v40 = vld [vmem:[#allocation19_spill] sm:$0xff] }
 0x238   : > { %4161 = vxpose.xlu0.b32.start.end [1/1] (short) (narrow) %v1216_v45, 8  ;;  %v1218_v29 = vmul.f32 %v6227_v28, %v7164_v56  ;;  %v630_v46 = vadd.f32 %v7742_v31, %v6795_v23  ;;  %v636_v17 = vadd.f32 %v7743_v9, %v6795_v23  ;;  %v642_v20 = vadd.f32 %v7744_v40, %v6795_v23  ;;  %v4989_v45 = vld [vmem:[#allocation8] sm:$0xff]  ;;  %v4996_v31 = vld [vmem:[#allocation8 + $0x38] sm:$0xff]  ;;  %v6240_v40 = vld [vmem:[%s6710_s1 + $0x50] sm:$0xff] }
 0x239   : > { %v7745_v28 = vld [vmem:[#allocation20_spill] sm:$0xff]  ;;  %v6237_v9 = vld [vmem:[%s6710_s1 + $0x38] sm:$0xff] }
 0x23a   : > { %v6229_v42 = vpop.eup %6228 }
 0x23b   : > { %4266 = vxpose.xlu1.b32.start.end [1/1] (short) (narrow) %v1217_v32, 8  ;;  %v1219_v52 = vmul.f32 %v6229_v42, %v7172_v48  ;;  %v4990_v32 = vld [vmem:[#allocation8 + $0x8] sm:$0xff] }
 0x23c   : > { %4371 = vxpose.xlu0.b32.start.end [1/1] (short) (narrow) %v1218_v29, 8  ;;  %v648_v29 = vadd.f32 %v7745_v28, %v6795_v23  ;;  %v5985_v42 = vpack.c.bf16 %v4990_v32, %v4989_v45  ;;  %v6243_v45 = vld [vmem:[%s6710_s1 + $0x68] sm:$0xff]  ;;  %v4997_v32 = vld [vmem:[#allocation8 + $0x40] sm:$0xff] }
 0x23d   : > { %v4998_v28 = vld [vmem:[#allocation8 + $0x48] sm:$0xff] }
 0x23e   : > { %v1236_v33 = vpop.trf.xlu0  ;;  %5986 = vmatprep.subr.bf16.mxu0 %v5985_v42 }
 0x23f   : > { %4476 = vxpose.xlu1.b32.start.end [1/1] (short) (narrow) %v1219_v52, 8  ;;  %5604 = vmatmul.mubr.msk.f32.vlgmr.msra.gmra.mrb[0].mxu1 %vm1252_vm1, %v1236_v33 }
 0x240   : > { %5607 = vmatpush3.msra.mxu1 %v492_v38  ;;  %5608 = vmatprep.mubr.msk.f32.mxu1 %vm6461_vm0, %v7741_v57  ;;  %v7746_v38 = vld [vmem:[#allocation21_spill] sm:$0xff] }
 0x241   : > { %5611 = vmatprep.subr.mxu1 %v7741_v57  ;;  %v654_v33 = vadd.f32 %v7746_v38, %v6795_v23  ;;  %5988 = vmatpush3.bf16.msra.mxu0 %v5985_v42  ;;  %v6001_v42 = vpack.c.bf16 %v4998_v28, %v4997_v32 }
 0x242   : > { %v1342_v4 = vpop.trf.xlu0 }
 0x243   : > { %5609 = vmatmul.mubr.msk.f32.vlgmr.msra.gmra.mrb[2].mxu1 %vm1252_vm1, %v1342_v4  ;;  %v7747_v4 = vld [vmem:[#allocation22_spill] sm:$0xff] }
 0x244   : > { %5612 = vmatpush3.msra.mxu1 %v498_v34  ;;  %5613 = vmatprep.mubr.msk.f32.mxu1 %vm6461_vm0, %v7741_v57 }
 0x245   : > { %5616 = vmatprep.subr.mxu1 %v7741_v57 }
 0x246   : > { %v1447_v56 = vpop.trf.xlu1 }
 0x247   : > { %5614 = vmatmul.mubr.msk.f32.vlgmr.msra.gmra.mrb[4].mxu1 %vm1252_vm1, %v1447_v56 }
 0x248   : > { %5617 = vmatpush3.msra.mxu1 %v504_v30  ;;  %5618 = vmatprep.mubr.msk.f32.mxu1 %vm6461_vm0, %v7741_v57  ;;  %v660_v30 = vadd.f32 %v7747_v4, %v6795_v23 }
 0x249   : > { %5621 = vmatprep.subr.mxu1 %v7741_v57 }
 0x24c   : > { %v1552_v48 = vpop.trf.xlu1 }
 0x24d   : > { %5619 = vmatmul.mubr.msk.f32.vlgmr.msra.gmra.mrb[6].mxu1 %vm1252_vm1, %v1552_v48 }
 0x24e   : > { %5622 = vmatpush3.msra.mxu1 %v510_v36  ;;  %5623 = vmatprep.mubr.msk.f32.mxu1 %vm6461_vm0, %v7741_v57  ;;  %v7748_v36 = vld [vmem:[#allocation23_spill] sm:$0xff] }
 0x24f   : > { %5626 = vmatprep.subr.mxu1 %v7741_v57  ;;  %v666_v48 = vadd.f32 %v7748_v36, %v6795_v23  ;;  %v6248_v36 = vld [vmem:[%s6710_s1 + $0x90] sm:$0xff] }
 0x250   : > { %v1657_v51 = vpop.trf.xlu0 }
 0x251   : > { %5624 = vmatmul.mubr.msk.f32.vlgmr.msra.gmra.mrb[8].mxu1 %vm1252_vm1, %v1657_v51  ;;  %v4582_v51 = vld [vmem:[#allocation7 + $0x8] sm:$0xff] }
 0x252   : > { %5627 = vmatpush3.msra.mxu1 %v516_v44  ;;  %5628 = vmatprep.mubr.msk.f32.mxu1 %vm6461_vm0, %v7741_v57  ;;  %v4581_v44 = vld [vmem:[#allocation7] sm:$0xff] }
 0x253   : > { %5631 = vmatprep.subr.mxu1 %v7741_v57 }
 0x25b   : > { %v1762_v24 = vpop.trf.xlu1 }
 0x25c   : > { %5629 = vmatmul.mubr.msk.f32.vlgmr.msra.gmra.mrb[10].mxu1 %vm1252_vm1, %v1762_v24  ;;  %v5953_v24 = vpack.c.bf16 %v4582_v51, %v4581_v44  ;;  %v6250_v51 = vld [vmem:[%s6710_s1 + $0xa0] sm:$0xff] }
 0x25d   : > { %5632 = vmatpush3.msra.mxu1 %v522_v54  ;;  %5633 = vmatprep.mubr.msk.f32.mxu1 %vm6461_vm0, %v7741_v57  ;;  %v1867_v21 = vpop.trf.xlu0 }
 0x25e   : > { %5636 = vmatprep.subr.mxu1 %v7741_v57 }
 0x260   : > { %5634 = vmatmul.mubr.msk.f32.vlgmr.msra.gmra.mrb[12].mxu1 %vm1252_vm1, %v1867_v21 }
 0x261   : > { %5637 = vmatpush3.msra.mxu1 %v528_v1  ;;  %5638 = vmatprep.mubr.msk.f32.mxu1 %vm6461_vm0, %v7741_v57  ;;  %v7749_v1 = vld [vmem:[#allocation24_spill] sm:$0xff] }
 0x262   : > { %5641 = vmatprep.subr.mxu1 %v7741_v57  ;;  %v672_v21 = vadd.f32 %v7749_v1, %v6795_v23  ;;  %v4999_v1 = vld [vmem:[#allocation8 + $0x50] sm:$0xff] }
 0x265   : > { %v1972_v8 = vpop.trf.xlu1 }
 0x266   : > { %5639 = vmatmul.mubr.msk.f32.vlgmr.msra.gmra.mrb[14].mxu1 %vm1252_vm1, %v1972_v8  ;;  %v4584_v8 = vld [vmem:[#allocation7 + $0x18] sm:$0xff] }
 0x267   : > { %5642 = vmatpush3.msra.mxu1 %v534_v12  ;;  %5643 = vmatprep.mubr.msk.f32.mxu1 %vm6461_vm0, %v7741_v57  ;;  %v4583_v12 = vld [vmem:[#allocation7 + $0x10] sm:$0xff] }
 0x268   : > { %5646 = vmatprep.subr.mxu1 %v7741_v57 }
 0x26b   : > { %v2077_v3 = vpop.trf.xlu0 }
 0x26c   : > { %5644 = vmatmul.mubr.msk.f32.vlgmr.msra.gmra.mrb[16].mxu1 %vm1252_vm1, %v2077_v3  ;;  %v5957_v3 = vpack.c.bf16 %v4584_v8, %v4583_v12  ;;  %v6252_v12 = vld [vmem:[%s6710_s1 + $0xb0] sm:$0xff] }
 0x26d   : > { %5647 = vmatpush3.msra.mxu1 %v540_v26  ;;  %5648 = vmatprep.mubr.msk.f32.mxu1 %vm6461_vm0, %v7741_v57 }
 0x26e   : > { %5651 = vmatprep.subr.mxu1 %v7741_v57 }
 0x274   : > { %v2182_v63 = vpop.trf.xlu1 }
 0x275   : > { %5649 = vmatmul.mubr.msk.f32.vlgmr.msra.gmra.mrb[18].mxu1 %vm1252_vm1, %v2182_v63  ;;  %v4586_v63 = vld [vmem:[#allocation7 + $0x28] sm:$0xff] }
 0x276   : > { %5652 = vmatpush3.msra.mxu1 %v546_v41  ;;  %5653 = vmatprep.mubr.msk.f32.mxu1 %vm6461_vm0, %v7741_v57  ;;  %v4585_v41 = vld [vmem:[#allocation7 + $0x20] sm:$0xff] }
 0x277   : > { %5656 = vmatprep.subr.mxu1 %v7741_v57  ;;  %v5961_v23 = vpack.c.bf16 %v4586_v63, %v4585_v41  ;;  %v6253_v41 = vld [vmem:[%s6710_s1 + $0xb8] sm:$0xff]  ;;  %v6254_v63 = vld [vmem:[%s6710_s1 + $0xc0] sm:$0xff] }
 0x279   : > { %v2287_v7 = vpop.trf.xlu0 }
 0x27a   : > { %5654 = vmatmul.mubr.msk.f32.vlgmr.msra.gmra.mrb[20].mxu1 %vm1252_vm1, %v2287_v7  ;;  %v4587_v7 = vld [vmem:[#allocation7 + $0x30] sm:$0xff] }
 0x27b   : > { %5657 = vmatpush3.msra.mxu1 %v552_v58  ;;  %5658 = vmatprep.mubr.msk.f32.mxu1 %vm6461_vm0, %v7741_v57  ;;  %v6230_v58 = vld [vmem:[%s6710_s1] sm:$0xff] }
 0x27c   : > { %5661 = vmatprep.subr.mxu1 %v7741_v57 }
 0x280   : > { %v2392_v25 = vpop.trf.xlu1 }
 0x281   : > { %5659 = vmatmul.mubr.msk.f32.vlgmr.msra.gmra.mrb[22].mxu1 %vm1252_vm1, %v2392_v25  ;;  %v4991_v25 = vld [vmem:[#allocation8 + $0x10] sm:$0xff] }
 0x282   : > { %5662 = vmatpush3.msra.mxu1 %v558_v13  ;;  %5663 = vmatprep.mubr.msk.f32.mxu1 %vm6461_vm0, %v7741_v57  ;;  %v4588_v13 = vld [vmem:[#allocation7 + $0x38] sm:$0xff] }
 0x283   : > { %5666 = vmatprep.subr.mxu1 %v7741_v57 }
 0x286   : > { %v2497_v60 = vpop.trf.xlu0 }
 0x287   : > { %5664 = vmatmul.mubr.msk.f32.vlgmr.msra.gmra.mrb[24].mxu1 %vm1252_vm1, %v2497_v60 }
 0x288   : > { %5667 = vmatpush3.msra.mxu1 %v564_v35  ;;  %5668 = vmatprep.mubr.msk.f32.mxu1 %vm6461_vm0, %v7741_v57  ;;  %v4992_v35 = vld [vmem:[#allocation8 + $0x18] sm:$0xff] }
 0x289   : > { %5671 = vmatprep.subr.mxu1 %v7741_v57  ;;  %v5989_v60 = vpack.c.bf16 %v4992_v35, %v4991_v25  ;;  %v6257_v25 = vld [vmem:[%s6710_s1 + $0xd8] sm:$0xff]  ;;  %v5001_v35 = vld [vmem:[#allocation8 + $0x60] sm:$0xff] }
 0x28b   : > { %v2602_v47 = vpop.trf.xlu1  ;;  %5990 = vmatprep.subr.bf16.mxu0 %v5989_v60 }
 0x28c   : > { %5669 = vmatmul.mubr.msk.f32.vlgmr.msra.gmra.mrb[26].mxu1 %vm1252_vm1, %v2602_v47  ;;  %v4590_v47 = vld [vmem:[#allocation7 + $0x48] sm:$0xff]  ;;  %5992 = vmatpush3.bf16.msra.mxu0 %v5989_v60 }
 0x28d   : > { %5672 = vmatpush3.msra.mxu1 %v570_v55  ;;  %5673 = vmatprep.mubr.msk.f32.mxu1 %vm6461_vm0, %v7741_v57  ;;  %v5965_v55 = vpack.c.bf16 %v4588_v13, %v4587_v7  ;;  %v6256_v13 = vld [vmem:[%s6710_s1 + $0xd0] sm:$0xff]  ;;  %v5002_v60 = vld [vmem:[#allocation8 + $0x68] sm:$0xff] }
 0x28e   : > { %v2707_v19 = vpop.trf.xlu0  ;;  %5676 = vmatprep.subr.mxu1 %v7741_v57 }
 0x290   : > { %5674 = vmatmul.mubr.msk.f32.vlgmr.msra.gmra.mrb[28].mxu1 %vm1252_vm1, %v2707_v19 }
 0x291   : > { %5677 = vmatpush3.msra.mxu1 %v576_v10  ;;  %5678 = vmatprep.mubr.msk.f32.mxu1 %vm6461_vm0, %v7741_v57  ;;  %v4591_v10 = vld [vmem:[#allocation7 + $0x50] sm:$0xff] }
 0x292   : > { %5681 = vmatprep.subr.mxu1 %v7741_v57 }
 0x295   : > { %v2812_v11 = vpop.trf.xlu1 }
 0x296   : > { %5679 = vmatmul.mubr.msk.f32.vlgmr.msra.gmra.mrb[30].mxu1 %vm1252_vm1, %v2812_v11 }
 0x297   : > { %5682 = vmatpush3.msra.mxu1 %v582_v37  ;;  %5683 = vmatprep.mubr.msk.f32.mxu1 %vm6461_vm0, %v7741_v57  ;;  %v4592_v37 = vld [vmem:[#allocation7 + $0x58] sm:$0xff] }
 0x298   : > { %5686 = vmatprep.subr.mxu1 %v7741_v57  ;;  %v5973_v11 = vpack.c.bf16 %v4592_v37, %v4591_v10  ;;  %v6259_v37 = vld [vmem:[%s6710_s1 + $0xe8] sm:$0xff] }
 0x299   : > { %v2917_v15 = vpop.trf.xlu0 }
 0x29a   : > { %5684 = vmatmul.mubr.msk.f32.vlgmr.msra.gmra.mrb[32].mxu1 %vm1252_vm1, %v2917_v15  ;;  %v4594_v15 = vld [vmem:[#allocation7 + $0x68] sm:$0xff] }
 0x29b   : > { %5687 = vmatpush3.msra.mxu1 %v588_v2  ;;  %5688 = vmatprep.mubr.msk.f32.mxu1 %vm6461_vm0, %v7741_v57  ;;  %v4593_v2 = vld [vmem:[#allocation7 + $0x60] sm:$0xff] }
 0x29c   : > { %5691 = vmatprep.subr.mxu1 %v7741_v57 }
 0x29d   : > { %v3022_v43 = vpop.trf.xlu1 }
 0x29e   : > { %5689 = vmatmul.mubr.msk.f32.vlgmr.msra.gmra.mrb[34].mxu1 %vm1252_vm1, %v3022_v43  ;;  %v4595_v43 = vld [vmem:[#allocation7 + $0x70] sm:$0xff] }
 0x29f   : > { %5692 = vmatpush3.msra.mxu1 %v594_v27  ;;  %5693 = vmatprep.mubr.msk.f32.mxu1 %vm6461_vm0, %v7741_v57  ;;  %v5977_v27 = vpack.c.bf16 %v4594_v15, %v4593_v2 }
 0x2a0   : > { %5696 = vmatprep.subr.mxu1 %v7741_v57 }
 0x2a2   : > { %v3127_v16 = vpop.trf.xlu0 }
 0x2a3   : > { %5694 = vmatmul.mubr.msk.f32.vlgmr.msra.gmra.mrb[36].mxu1 %vm1252_vm1, %v3127_v16 }
 0x2a4   : > { %5697 = vmatpush3.msra.mxu1 %v600_v62  ;;  %5698 = vmatprep.mubr.msk.f32.mxu1 %vm6461_vm0, %v7741_v57  ;;  %v4596_v62 = vld [vmem:[#allocation7 + $0x78] sm:$0xff] }
 0x2a5   : > { %5701 = vmatprep.subr.mxu1 %v7741_v57  ;;  %v5981_v16 = vpack.c.bf16 %v4596_v62, %v4595_v43 }
 0x2a7   : > { %v3232_v49 = vpop.trf.xlu1 }
 0x2a8   : > { %5699 = vmatmul.mubr.msk.f32.vlgmr.msra.gmra.mrb[38].mxu1 %vm1252_vm1, %v3232_v49  ;;  %v3337_v18 = vpop.trf.xlu0  ;;  %v4994_v49 = vld [vmem:[#allocation8 + $0x28] sm:$0xff] }
 0x2a9   : > { %5702 = vmatpush3.msra.mxu1 %v606_v14  ;;  %5703 = vmatprep.mubr.msk.f32.mxu1 %vm6461_vm0, %v7741_v57  ;;  %v4993_v14 = vld [vmem:[#allocation8 + $0x20] sm:$0xff] }
 0x2aa   : > { %5706 = vmatprep.subr.mxu1 %v7741_v57 }
 0x2ab   : > { %v3442_v0 = vpop.trf.xlu1 }
 0x2ac   : > { %5704 = vmatmul.mubr.msk.f32.vlgmr.msra.gmra.mrb[40].mxu1 %vm1252_vm1, %v3337_v18  ;;  %v3547_v39 = vpop.trf.xlu0  ;;  %v5993_v18 = vpack.c.bf16 %v4994_v49, %v4993_v14 }
 0x2ad   : > { %5707 = vmatpush3.msra.mxu1 %v612_v53  ;;  %5708 = vmatprep.mubr.msk.f32.mxu1 %vm6461_vm0, %v7741_v57  ;;  %v6231_v53 = vld [vmem:[%s6710_s1 + $0x8] sm:$0xff] }
 0x2ae   : > { %5711 = vmatprep.subr.mxu1 %v7741_v57  ;;  %5994 = vmatprep.subr.bf16.mxu0 %v5993_v18 }
 0x2af   : > { %v3652_v6 = vpop.trf.xlu1  ;;  %5996 = vmatpush3.bf16.msra.mxu0 %v5993_v18 }
 0x2b0   : > { %5709 = vmatmul.mubr.msk.f32.vlgmr.msra.gmra.mrb[42].mxu1 %vm1252_vm1, %v3442_v0  ;;  %v3757_v5 = vpop.trf.xlu0  ;;  %v6232_v0 = vld [vmem:[%s6710_s1 + $0x10] sm:$0xff] }
 0x2b1   : > { %5712 = vmatpush3.msra.mxu1 %v618_v22  ;;  %5713 = vmatprep.mubr.msk.f32.mxu1 %vm6461_vm0, %v7741_v57  ;;  %v6233_v22 = vld [vmem:[%s6710_s1 + $0x18] sm:$0xff] }
 0x2b2   : > { %5716 = vmatprep.subr.mxu1 %v7741_v57 }
 0x2b3   : > { %v3862_v50 = vpop.trf.xlu1 }
 0x2b4   : > { %5714 = vmatmul.mubr.msk.f32.vlgmr.msra.gmra.mrb[44].mxu1 %vm1252_vm1, %v3547_v39  ;;  %v3967_v61 = vpop.trf.xlu0  ;;  %v6234_v39 = vld [vmem:[%s6710_s1 + $0x20] sm:$0xff] }
 0x2b5   : > { %5717 = vmatpush3.msra.mxu1 %v624_v59  ;;  %5718 = vmatprep.mubr.msk.f32.mxu1 %vm6461_vm0, %v7741_v57  ;;  %v6235_v59 = vld [vmem:[%s6710_s1 + $0x28] sm:$0xff] }
 0x2b6   : > { %5721 = vmatprep.subr.mxu1 %v7741_v57 }
 0x2b7   : > { %v4072_v52 = vpop.trf.xlu1 }
 0x2b8   : > { %5719 = vmatmul.mubr.msk.f32.vlgmr.msra.gmra.mrb[46].mxu1 %vm1252_vm1, %v3652_v6  ;;  %v4177_v34 = vpop.trf.xlu0  ;;  %v4995_v6 = vld [vmem:[#allocation8 + $0x30] sm:$0xff] }
 0x2b9   : > { %5722 = vmatpush3.msra.mxu1 %v630_v46  ;;  %5723 = vmatprep.mubr.msk.f32.mxu1 %vm6461_vm0, %v7741_v57  ;;  %v6236_v46 = vld [vmem:[%s6710_s1 + $0x30] sm:$0xff] }
 0x2ba   : > { %5726 = vmatprep.subr.mxu1 %v7741_v57 }
 0x2bb   : > { %v4282_v56 = vpop.trf.xlu1 }
 0x2bc   : > { %5724 = vmatmul.mubr.msk.f32.vlgmr.msra.gmra.mrb[48].mxu1 %vm1252_vm1, %v3757_v5  ;;  %v4387_v54 = vpop.trf.xlu0  ;;  %v5997_v5 = vpack.c.bf16 %v4996_v31, %v4995_v6 }
 0x2bd   : > { %5727 = vmatpush3.msra.mxu1 %v636_v17  ;;  %5728 = vmatprep.mubr.msk.f32.mxu1 %vm6461_vm0, %v7741_v57  ;;  %v6238_v17 = vld [vmem:[%s6710_s1 + $0x40] sm:$0xff] }
 0x2be   : > { %5731 = vmatprep.subr.mxu1 %v7741_v57  ;;  %5998 = vmatprep.subr.bf16.mxu0 %v5997_v5 }
 0x2bf   : > { %v4492_v26 = vpop.trf.xlu1  ;;  %6000 = vmatpush3.bf16.msra.mxu0 %v5997_v5 }
 0x2c0   : > { %5729 = vmatmul.mubr.msk.f32.vlgmr.msra.gmra.mrb[50].mxu1 %vm1252_vm1, %v3862_v50  ;;  %v6239_v50 = vld [vmem:[%s6710_s1 + $0x48] sm:$0xff]  ;;  %6002 = vmatprep.subr.bf16.mxu0 %v6001_v42 }
 0x2c1   : > { %5732 = vmatpush3.msra.mxu1 %v642_v20  ;;  %5733 = vmatprep.mubr.msk.f32.mxu1 %vm6461_vm0, %v7741_v57  ;;  %v6241_v20 = vld [vmem:[%s6710_s1 + $0x58] sm:$0xff] }
 0x2c2   : > { %5736 = vmatprep.subr.mxu1 %v7741_v57 }
 0x2c3   : > { %6004 = vmatpush3.bf16.msra.mxu0 %v6001_v42 }
 0x2c4   : > { %5734 = vmatmul.mubr.msk.f32.vlgmr.msra.gmra.mrb[52].mxu1 %vm1252_vm1, %v3967_v61  ;;  %v6242_v61 = vld [vmem:[%s6710_s1 + $0x60] sm:$0xff] }
 0x2c5   : > { %5737 = vmatpush3.msra.mxu1 %v648_v29  ;;  %5738 = vmatprep.mubr.msk.f32.mxu1 %vm6461_vm0, %v7741_v57  ;;  %v6244_v29 = vld [vmem:[%s6710_s1 + $0x70] sm:$0xff] }
 0x2c6   : > { %5741 = vmatprep.subr.mxu1 %v7741_v57 }
 0x2c8   : > { %5739 = vmatmul.mubr.msk.f32.vlgmr.msra.gmra.mrb[54].mxu1 %vm1252_vm1, %v4072_v52 }
 0x2c9   : > { %5742 = vmatpush3.msra.mxu1 %v654_v33  ;;  %5743 = vmatprep.mubr.msk.f32.mxu1 %vm6461_vm0, %v7741_v57  ;;  %v6245_v33 = vld [vmem:[%s6710_s1 + $0x78] sm:$0xff] }
 0x2ca   : > { %5746 = vmatprep.subr.mxu1 %v7741_v57 }
 0x2cc   : > { %5744 = vmatmul.mubr.msk.f32.vlgmr.msra.gmra.mrb[56].mxu1 %vm1252_vm1, %v4177_v34  ;;  %v6246_v34 = vld [vmem:[%s6710_s1 + $0x80] sm:$0xff] }
 0x2cd   : > { %5747 = vmatpush3.msra.mxu1 %v660_v30  ;;  %5748 = vmatprep.mubr.msk.f32.mxu1 %vm6461_vm0, %v7741_v57 }
 0x2ce   : > { %5751 = vmatprep.subr.mxu1 %v7741_v57 }
 0x2d0   : > { %5749 = vmatmul.mubr.msk.f32.vlgmr.msra.gmra.mrb[58].mxu1 %vm1252_vm1, %v4282_v56  ;;  %v6247_v56 = vld [vmem:[%s6710_s1 + $0x88] sm:$0xff] }
 0x2d1   : > { %5752 = vmatpush3.msra.mxu1 %v666_v48  ;;  %5753 = vmatprep.mubr.msk.f32.mxu1 %vm6461_vm0, %v7741_v57  ;;  %v6249_v48 = vld [vmem:[%s6710_s1 + $0x98] sm:$0xff] }
 0x2d2   : > { %5756 = vmatprep.subr.mxu1 %v7741_v57 }
 0x2d4   : > { %5754 = vmatmul.mubr.msk.f32.vlgmr.msra.gmra.mrb[60].mxu1 %vm1252_vm1, %v4387_v54 }
 0x2d5   : > { %5757 = vmatpush3.msra.mxu1 %v672_v21  ;;  %5758 = vmatprep.mubr.msk.f32.mxu1 %vm6461_vm0, %v7741_v57  ;;  %v4589_v57 = vld [vmem:[#allocation7 + $0x40] sm:$0xff]  ;;  %v5000_v21 = vld [vmem:[#allocation8 + $0x58] sm:$0xff] }
 0x2d6   : > { %5954 = vmatprep.subr.bf16.mxu1 %v5953_v24  ;;  %v5969_v19 = vpack.c.bf16 %v4590_v47, %v4589_v57  ;;  %v6258_v57 = vld [vmem:[%s6710_s1 + $0xe0] sm:$0xff]  ;;  %v6009_v47 = vpack.c.bf16 %v5002_v60, %v5001_v35 }
 0x2d8   : > { %5759 = vmatmul.mubr.msk.f32.vlgmr.msra.gmra.mrb[62].mxu1 %vm1252_vm1, %v4492_v26  ;;  %v6005_v26 = vpack.c.bf16 %v5000_v21, %v4999_v1 }
 0x2d9   : > { %5956 = vmatpush3.bf16.msra.mxu1 %v5953_v24  ;;  %5793 = vmatprep.mubr.f32.mxu1 %v6230_v58  ;;  %v6251_v24 = vld [vmem:[%s6710_s1 + $0xa8] sm:$0xff] }
 0x2da   : > { %5958 = vmatprep.subr.bf16.mxu1 %v5957_v3  ;;  %6006 = vmatprep.subr.bf16.mxu0 %v6005_v26 }
 0x2db   : > { %6008 = vmatpush3.bf16.msra.mxu0 %v6005_v26 }
 0x2dc   : > { %6010 = vmatprep.subr.bf16.mxu0 %v6009_v47 }
 0x2dd   : > { %5960 = vmatpush3.bf16.msra.mxu1 %v5957_v3 }
 0x2de   : > { %5962 = vmatprep.subr.bf16.mxu1 %v5961_v23 }
 0x2df   : > { %6012 = vmatpush3.bf16.msra.mxu0 %v6009_v47 }
 0x2e1   : > { %5964 = vmatpush3.bf16.msra.mxu1 %v5961_v23  ;;  %v6255_v23 = vld [vmem:[%s6710_s1 + $0xc8] sm:$0xff] }
 0x2e2   : > { %5966 = vmatprep.subr.bf16.mxu1 %v5965_v55 }
 0x2e5   : > { %5968 = vmatpush3.bf16.msra.mxu1 %v5965_v55  ;;  %v5003_v55 = vld [vmem:[#allocation8 + $0x70] sm:$0xff] }
 0x2e6   : > { %5970 = vmatprep.subr.bf16.mxu1 %v5969_v19 }
 0x2e9   : > { %5972 = vmatpush3.bf16.msra.mxu1 %v5969_v19  ;;  %v5004_v19 = vld [vmem:[#allocation8 + $0x78] sm:$0xff] }
 0x2ea   : > { %5974 = vmatprep.subr.bf16.mxu1 %v5973_v11  ;;  %v6013_v10 = vpack.c.bf16 %v5004_v19, %v5003_v55  ;;  %v7477_v19 = vld [vmem:[%s7703_s4] ss:$0 sm:$0xff] }
 0x2ec   : > { %6014 = vmatprep.subr.bf16.mxu0 %v6013_v10 }
 0x2ed   : > { %5976 = vmatpush3.bf16.msra.mxu1 %v5973_v11  ;;  %v6260_v11 = vld [vmem:[%s6710_s1 + $0xf0] sm:$0xff]  ;;  %6016 = vmatpush3.bf16.msra.mxu0 %v6013_v10 }
 0x2ee   : > { %5978 = vmatprep.subr.bf16.mxu1 %v5977_v27 }
 0x2f1   : > { %5980 = vmatpush3.bf16.msra.mxu1 %v5977_v27  ;;  %v6261_v27 = vld [vmem:[%s6710_s1 + $0xf8] sm:$0xff]  ;;  %s6380_s1 = sshll.u32 %s6462_s22, 4  ;;  %s6381_s1 = int_to_ptr.vmem [resolvable:$false] %s6380_s1 }
 0x2f2   : > { %5982 = vmatprep.subr.bf16.mxu1 %v5981_v16  ;;  %s6382_s30 = scalar_lea.vmem %s6381_s1, 8192  ;;  %p6383_p12 = scmp.lt.s32.totalorder %s7652_s16, %s6381_s1 }
 0x2f3   : > { %p6384_p2 = scmp.lt.s32.totalorder %s6382_s30, %s6376_s21 }
 0x2f5   : > { %5984 = vmatpush3.bf16.msra.mxu1 %v5981_v16  ;;  %p6385_p1 = por %p6384_p2, %p6383_p12 }
 0x2f7   : > { %p6386_p4 = pnand %p6385_p1, %p6379_p7 }
 0x2f8   : > { %5794 = vmatmul.mubr.f32.vlgmr.msra.gmra.mrb[64].mxu1 %v6231_v53 }
 0x2f9   : > { %5796 = vmatprep.mubr.f32.mxu1 %v6232_v0 }
 0x2fc   : > { %5797 = vmatmul.mubr.f32.gmra.mrb[66].mxu1 %v6233_v22 }
 0x2fd   : > { %5799 = vmatprep.mubr.f32.mxu1 %v6234_v39 }
 0x300   : > { %5800 = vmatmul.mubr.f32.gmra.mrb[68].mxu1 %v6235_v59 }
 0x301   : > { %5802 = vmatprep.mubr.f32.mxu1 %v6236_v46 }
 0x304   : > { %5803 = vmatmul.mubr.f32.gmra.mrb[70].mxu1 %v6237_v9 }
 0x305   : > { %5805 = vmatprep.mubr.f32.mxu1 %v6238_v17 }
 0x308   : > { %5806 = vmatmul.mubr.f32.gmra.mrb[72].mxu1 %v6239_v50 }
 0x309   : > { %5808 = vmatprep.mubr.f32.mxu1 %v6240_v40 }
 0x30c   : > { %5809 = vmatmul.mubr.f32.gmra.mrb[74].mxu1 %v6241_v20 }
 0x30d   : > { %5811 = vmatprep.mubr.f32.mxu1 %v6242_v61 }
 0x310   : > { %5812 = vmatmul.mubr.f32.gmra.mrb[76].mxu1 %v6243_v45 }
 0x311   : > { %5814 = vmatprep.mubr.f32.mxu1 %v6244_v29 }
 0x312   : > { %v7393_v52 = vpop.f32.mrb[0].mxu1 }
 0x313   : > { %v5605_v38 = vpop.f32.mrb[1].mxu1 }
 0x314   : > { %5815 = vmatmul.mubr.f32.gmra.mrb[78].mxu1 %v6245_v33 }
 0x315   : > { %5817 = vmatprep.mubr.f32.mxu1 %v6246_v34 }
 0x316   : > { %v7397_v4 = vpop.f32.mrb[2].mxu1 }
 0x317   : > { %v5610_v30 = vpop.f32.mrb[3].mxu1 }
 0x318   : > { %5818 = vmatmul.mubr.f32.gmra.mrb[80].mxu1 %v6247_v56 }
 0x319   : > { %5820 = vmatprep.mubr.f32.mxu1 %v6248_v36 }
 0x31a   : > { %v7402_v44 = vpop.f32.mrb[4].mxu1 }
 0x31b   : > { %v5615_v54 = vpop.f32.mrb[5].mxu1 }
 0x31c   : > { %5821 = vmatmul.mubr.f32.gmra.mrb[82].mxu1 %v6249_v48 }
 0x31d   : > { %5823 = vmatprep.mubr.f32.mxu1 %v6250_v51 }
 0x320   : > { %5824 = vmatmul.mubr.f32.gmra.mrb[84].mxu1 %v6251_v24  ;;  %v7407_v8 = vpop.f32.mrb[6].mxu1 }
 0x321   : > { %5826 = vmatprep.mubr.f32.mxu1 %v6252_v12  ;;  %v5620_v3 = vpop.f32.mrb[7].mxu1 }
 0x324   : > { %5827 = vmatmul.mubr.f32.gmra.mrb[86].mxu1 %v6253_v41  ;;  %v7411_v58 = vpop.f32.mrb[8].mxu1 }
 0x325   : > { %5829 = vmatprep.mubr.f32.mxu1 %v6254_v63  ;;  %v5625_v7 = vpop.f32.mrb[9].mxu1 }
 0x328   : > { %5830 = vmatmul.mubr.f32.gmra.mrb[88].mxu1 %v6255_v23 }
 0x329   : > { %5832 = vmatprep.mubr.f32.mxu1 %v6256_v13 }
 0x32c   : > { %5833 = vmatmul.mubr.f32.gmra.mrb[90].mxu1 %v6257_v25 }
 0x32d   : > { %5835 = vmatprep.mubr.f32.mxu1 %v6258_v57 }
 0x32f   : > { %v7419_v2 = vpop.f32.mrb[10].mxu1 }
 0x330   : > { %5836 = vmatmul.mubr.f32.gmra.mrb[92].mxu1 %v6259_v37  ;;  %v5630_v15 = vpop.f32.mrb[11].mxu1  ;;  %v7750_v37 = vld [vmem:[#allocation16_spill] sm:$0xff] }
 0x331   : > { %5838 = vmatprep.mubr.f32.mxu1 %v6260_v11  ;;  %v4836_v11 = vrot.slane %v7397_v4, %v7750_v37  ;;  %v4840_v4 = vrot.slane %v7402_v44, %v7750_v37 }
 0x333   : > { %v7422_v43 = vpop.f32.mrb[12].mxu1 }
 0x334   : > { %5839 = vmatmul.mubr.f32.gmra.mrb[94].mxu1 %v6261_v27  ;;  %v5635_v62 = vpop.f32.mrb[13].mxu1 }
 0x335   : > { %v4832_v62 = vrot.slane %v7393_v52, %v7750_v37 }
 0x339   : > { %v7424_v16 = vpop.f32.mrb[14].mxu1 }
 0x33a   : > { %v5640_v14 = vpop.f32.mrb[15].mxu1 }
 0x33f   : > { %v7426_v49 = vpop.f32.mrb[16].mxu1 }
 0x340   : > { %v5645_v18 = vpop.f32.mrb[17].mxu1 }
 0x348   : > { %v7428_v53 = vpop.f32.mrb[18].mxu1 }
 0x349   : > { %v5650_v0 = vpop.f32.mrb[19].mxu1 }
 0x34d   : > { %v7430_v22 = vpop.f32.mrb[20].mxu1 }
 0x34e   : > { %v5655_v39 = vpop.f32.mrb[21].mxu1 }
 0x354   : > { %v7432_v59 = vpop.f32.mrb[22].mxu1 }
 0x355   : > { %v5660_v6 = vpop.f32.mrb[23].mxu1 }
 0x356   : > { %v4844_v6 = vrot.slane %v7407_v8, %v7750_v37  ;;  %v4848_v8 = vrot.slane %v7411_v58, %v7750_v37 }
 0x35a   : > { %v7434_v31 = vpop.f32.mrb[24].mxu1 }
 0x35b   : > { %v5665_v46 = vpop.f32.mrb[25].mxu1 }
 0x35f   : > { %v7436_v5 = vpop.f32.mrb[26].mxu1 }
 0x360   : > { %v5670_v9 = vpop.f32.mrb[27].mxu1 }
 0x363   : > { %v7438_v17 = vpop.f32.mrb[28].mxu1 }
 0x364   : > { %v5675_v50 = vpop.f32.mrb[29].mxu1 }
 0x369   : > { %v7440_v40 = vpop.f32.mrb[30].mxu1 }
 0x36a   : > { %v5680_v20 = vpop.f32.mrb[31].mxu1 }
 0x36d   : > { %v7442_v61 = vpop.f32.mrb[32].mxu1 }
 0x36e   : > { %v5685_v45 = vpop.f32.mrb[33].mxu1 }
 0x371   : > { %v7444_v32 = vpop.f32.mrb[34].mxu1 }
 0x372   : > { %v5690_v28 = vpop.f32.mrb[35].mxu1 }
 0x373   : > { %v4852_v28 = vrot.slane %v7419_v2, %v7750_v37  ;;  %v4856_v2 = vrot.slane %v7422_v43, %v7750_v37 }
 0x376   : > { %v7446_v29 = vpop.f32.mrb[36].mxu1 }
 0x377   : > { %v5695_v42 = vpop.f32.mrb[37].mxu1 }
 0x37b   : > { %v7448_v38 = vpop.f32.mrb[38].mxu1 }
 0x37c   : > { %v5700_v33 = vpop.f32.mrb[39].mxu1 }
 0x37f   : > { %v7450_v34 = vpop.f32.mrb[40].mxu1 }
 0x380   : > { %v5705_v30 = vpop.f32.mrb[41].mxu1 }
 0x383   : > { %v7452_v56 = vpop.f32.mrb[42].mxu1 }
 0x384   : > { %v5710_v36 = vpop.f32.mrb[43].mxu1 }
 0x387   : > { %v7454_v48 = vpop.f32.mrb[44].mxu1 }
 0x388   : > { %v5715_v51 = vpop.f32.mrb[45].mxu1 }
 0x38b   : > { %v7456_v54 = vpop.f32.mrb[46].mxu1 }
 0x38c   : > { %v5720_v24 = vpop.f32.mrb[47].mxu1 }
 0x38d   : > { %v4860_v24 = vrot.slane %v7424_v16, %v7750_v37  ;;  %v4864_v16 = vrot.slane %v7426_v49, %v7750_v37 }
 0x38f   : > { %v7458_v1 = vpop.f32.mrb[48].mxu1 }
 0x390   : > { %v5725_v21 = vpop.f32.mrb[49].mxu1 }
 0x393   : > { %v7460_v12 = vpop.f32.mrb[50].mxu1 }
 0x394   : > { %v5730_v26 = vpop.f32.mrb[51].mxu1 }
 0x397   : > { %v7462_v3 = vpop.f32.mrb[52].mxu1 }
 0x398   : > { %v5735_v41 = vpop.f32.mrb[53].mxu1 }
 0x39b   : > { %v7464_v63 = vpop.f32.mrb[54].mxu1 }
 0x39c   : > { %v5740_v23 = vpop.f32.mrb[55].mxu1 }
 0x39f   : > { %v7466_v7 = vpop.f32.mrb[56].mxu1 }
 0x3a0   : > { %v5745_v13 = vpop.f32.mrb[57].mxu1 }
 0x3a3   : > { %v7468_v25 = vpop.f32.mrb[58].mxu1 }
 0x3a4   : > { %v5750_v35 = vpop.f32.mrb[59].mxu1 }
 0x3a5   : > { %v4868_v35 = vrot.slane %v7428_v53, %v7750_v37  ;;  %v4872_v53 = vrot.slane %v7430_v22, %v7750_v37 }
 0x3a7   : > { %v7470_v60 = vpop.f32.mrb[60].mxu1 }
 0x3a8   : > { %v5755_v55 = vpop.f32.mrb[61].mxu1 }
 0x3ab   : > { %v7472_v57 = vpop.f32.mrb[62].mxu1 }
 0x3ac   : > { %v5760_v47 = vpop.f32.mrb[63].mxu1 }
 0x3cb   : > { %v5795_v10 = vpop.f32.mrb[64].mxu1 }
 0x3cc   : > { %v4676_v15 = vadd.f32 %v5795_v10, %v7477_v19  ;;  %v4670_v27 = vpop.f32.mrb[65].mxu1 }
 0x3cd   : > { %v4671_v14 = vadd.f32 %v7477_v19, %v4670_v27  ;;  %v4876_v27 = vrot.slane %v7432_v59, %v7750_v37  ;;  %v4880_v59 = vrot.slane %v7434_v31, %v7750_v37 }
 0x3ce   : > { %v4958_v18 = vmul.f32 %v4836_v11, %v4676_v15 }
 0x3cf   : > { %v4957_v0 = vmul.f32 %v4832_v62, %v4671_v14  ;;  %v5798_v39 = vpop.f32.mrb[66].mxu1 }
 0x3d0   : > { %v4686_v46 = vadd.f32 %v5798_v39, %v7477_v19  ;;  %v4680_v9 = vpop.f32.mrb[67].mxu1 }
 0x3d1   : > { %v4681_v50 = vadd.f32 %v7477_v19, %v4680_v9  ;;  %5873 = vmatprep.mubr.f32.mxu0 %v4957_v0 }
 0x3d2   : > { %v4960_v20 = vmul.f32 %v4844_v6, %v4686_v46  ;;  %5874 = vmatmul.mubr.f32.vlgmr.msra.gmra.mrb[64].mxu0 %v4958_v18  ;;  %v4884_v6 = vrot.slane %v7436_v5, %v7750_v37  ;;  %v4888_v5 = vrot.slane %v7438_v17, %v7750_v37 }
 0x3d3   : > { %v4959_v52 = vmul.f32 %v4840_v4, %v4681_v50  ;;  %v5801_v45 = vpop.f32.mrb[68].mxu1 }
 0x3d4   : > { %v4696_v42 = vadd.f32 %v5801_v45, %v7477_v19  ;;  %v4690_v33 = vpop.f32.mrb[69].mxu1 }
 0x3d5   : > { %v4691_v30 = vadd.f32 %v7477_v19, %v4690_v33  ;;  %5876 = vmatprep.mubr.f32.mxu0 %v4959_v52  ;;  %v4892_v52 = vrot.slane %v7440_v40, %v7750_v37  ;;  %v4896_v40 = vrot.slane %v7442_v61, %v7750_v37 }
 0x3d6   : > { %v4962_v44 = vmul.f32 %v4852_v28, %v4696_v42  ;;  %5877 = vmatmul.mubr.f32.gmra.mrb[66].mxu0 %v4960_v20 }
 0x3d7   : > { %v4961_v36 = vmul.f32 %v4848_v8, %v4691_v30  ;;  %v5804_v51 = vpop.f32.mrb[70].mxu1  ;;  %v4900_v30 = vrot.slane %v7444_v32, %v7750_v37  ;;  %v4904_v32 = vrot.slane %v7446_v29, %v7750_v37 }
 0x3d8   : > { %v4706_v21 = vadd.f32 %v5804_v51, %v7477_v19  ;;  %v4700_v26 = vpop.f32.mrb[71].mxu1 }
 0x3d9   : > { %v4701_v41 = vadd.f32 %v7477_v19, %v4700_v26  ;;  %5879 = vmatprep.mubr.f32.mxu0 %v4961_v36  ;;  %v4908_v26 = vrot.slane %v7448_v38, %v7750_v37  ;;  %v4912_v38 = vrot.slane %v7450_v34, %v7750_v37 }
 0x3da   : > { %v4964_v58 = vmul.f32 %v4860_v24, %v4706_v21  ;;  %5880 = vmatmul.mubr.f32.gmra.mrb[68].mxu0 %v4962_v44 }
 0x3db   : > { %v4963_v23 = vmul.f32 %v4856_v2, %v4701_v41  ;;  %v5807_v13 = vpop.f32.mrb[72].mxu1 }
 0x3dc   : > { %v4716_v55 = vadd.f32 %v5807_v13, %v7477_v19  ;;  %v4710_v47 = vpop.f32.mrb[73].mxu1 }
 0x3dd   : > { %v4711_v10 = vadd.f32 %v7477_v19, %v4710_v47  ;;  %5882 = vmatprep.mubr.f32.mxu0 %v4963_v23 }
 0x3de   : > { %v4966_v43 = vmul.f32 %v4868_v35, %v4716_v55  ;;  %5883 = vmatmul.mubr.f32.gmra.mrb[70].mxu0 %v4964_v58  ;;  %v4916_v35 = vrot.slane %v7452_v56, %v7750_v37  ;;  %v4920_v56 = vrot.slane %v7454_v48, %v7750_v37 }
 0x3df   : > { %v4965_v11 = vmul.f32 %v4864_v16, %v4711_v10  ;;  %v5810_v15 = vpop.f32.mrb[74].mxu1 }
 0x3e0   : > { %v4726_v62 = vadd.f32 %v5810_v15, %v7477_v19  ;;  %v4720_v14 = vpop.f32.mrb[75].mxu1 }
 0x3e1   : > { %v4721_v18 = vadd.f32 %v7477_v19, %v4720_v14  ;;  %5885 = vmatprep.mubr.f32.mxu0 %v4965_v11  ;;  %v4924_v11 = vrot.slane %v7456_v54, %v7750_v37  ;;  %v4928_v54 = vrot.slane %v7458_v1, %v7750_v37 }
 0x3e2   : > { %v4968_v49 = vmul.f32 %v4876_v27, %v4726_v62  ;;  %5886 = vmatmul.mubr.f32.gmra.mrb[72].mxu0 %v4966_v43 }
 0x3e3   : > { %v4967_v0 = vmul.f32 %v4872_v53, %v4721_v18  ;;  %v5813_v39 = vpop.f32.mrb[76].mxu1  ;;  %v4932_v18 = vrot.slane %v7460_v12, %v7750_v37  ;;  %v4936_v12 = vrot.slane %v7462_v3, %v7750_v37 }
 0x3e4   : > { %v4736_v46 = vadd.f32 %v5813_v39, %v7477_v19  ;;  %v4730_v9 = vpop.f32.mrb[77].mxu1 }
 0x3e5   : > { %v4731_v4 = vadd.f32 %v7477_v19, %v4730_v9  ;;  %5888 = vmatprep.mubr.f32.mxu0 %v4967_v0  ;;  %v4940_v9 = vrot.slane %v7464_v63, %v7750_v37  ;;  %v4944_v63 = vrot.slane %v7466_v7, %v7750_v37 }
 0x3e6   : > { %v4970_v22 = vmul.f32 %v4884_v6, %v4736_v46  ;;  %5889 = vmatmul.mubr.f32.gmra.mrb[74].mxu0 %v4968_v49 }
 0x3e7   : > { %v4969_v50 = vmul.f32 %v4880_v59, %v4731_v4  ;;  %v5816_v20 = vpop.f32.mrb[78].mxu1 }
 0x3e8   : > { %v4746_v45 = vadd.f32 %v5816_v20, %v7477_v19  ;;  %v4740_v28 = vpop.f32.mrb[79].mxu1 }
 0x3e9   : > { %v4741_v42 = vadd.f32 %v7477_v19, %v4740_v28  ;;  %5891 = vmatprep.mubr.f32.mxu0 %v4969_v50 }
 0x3ea   : > { %v4972_v31 = vmul.f32 %v4892_v52, %v4746_v45  ;;  %5892 = vmatmul.mubr.f32.gmra.mrb[76].mxu0 %v4970_v22  ;;  %v4948_v52 = vrot.slane %v7468_v25, %v7750_v37 }
 0x3eb   : > { %v4971_v33 = vmul.f32 %v4888_v5, %v4741_v42  ;;  %v5819_v8 = vpop.f32.mrb[80].mxu1 }
 0x3ec   : > { %v4756_v44 = vadd.f32 %v5819_v8, %v7477_v19  ;;  %v4750_v36 = vpop.f32.mrb[81].mxu1 }
 0x3ed   : > { %v4751_v51 = vadd.f32 %v7477_v19, %v4750_v36  ;;  %5894 = vmatprep.mubr.f32.mxu0 %v4971_v33  ;;  %v4956_v33 = vrot.slane %v7472_v57, %v7750_v37 }
 0x3ee   : > { %v4974_v17 = vmul.f32 %v4900_v30, %v4756_v44  ;;  %5895 = vmatmul.mubr.f32.gmra.mrb[78].mxu0 %v4972_v31  ;;  %v4952_v30 = vrot.slane %v7470_v60, %v7750_v37 }
 0x3ef   : > { %v4973_v24 = vmul.f32 %v4896_v40, %v4751_v51  ;;  %v5822_v21 = vpop.f32.mrb[82].mxu1  ;;  %v7578_v40 = vld [vmem:[%s7705_s6] ss:$0 sm:$0xff] }
 0x3f0   : > { %v4766_v2 = vadd.f32 %v5822_v21, %v7477_v19  ;;  %v4760_v41 = vpop.f32.mrb[83].mxu1 }
 0x3f1   : > { %v4761_v58 = vadd.f32 %v7477_v19, %v4760_v41  ;;  %5897 = vmatprep.mubr.f32.mxu0 %v4973_v24 }
 0x3f2   : > { %v4976_v61 = vmul.f32 %v4908_v26, %v4766_v2  ;;  %5898 = vmatmul.mubr.f32.gmra.mrb[80].mxu0 %v4974_v17 }
 0x3f3   : > { %v4975_v23 = vmul.f32 %v4904_v32, %v4761_v58  ;;  %v5825_v13 = vpop.f32.mrb[84].mxu1 }
 0x3f4   : > { %v4776_v55 = vadd.f32 %v5825_v13, %v7477_v19  ;;  %v4770_v47 = vpop.f32.mrb[85].mxu1 }
 0x3f5   : > { %v4771_v16 = vadd.f32 %v7477_v19, %v4770_v47  ;;  %5900 = vmatprep.mubr.f32.mxu0 %v4975_v23 }
 0x3f6   : > { %v4978_v29 = vmul.f32 %v4916_v35, %v4776_v55  ;;  %5901 = vmatmul.mubr.f32.gmra.mrb[82].mxu0 %v4976_v61 }
 0x3f7   : > { %v4977_v10 = vmul.f32 %v4912_v38, %v4771_v16  ;;  %v5828_v43 = vpop.f32.mrb[86].mxu1 }
 0x3f8   : > { %v4786_v15 = vadd.f32 %v5828_v43, %v7477_v19  ;;  %v4780_v27 = vpop.f32.mrb[87].mxu1 }
 0x3f9   : > { %v4781_v62 = vadd.f32 %v7477_v19, %v4780_v27  ;;  %5903 = vmatprep.mubr.f32.mxu0 %v4977_v10 }
 0x3fa   : > { %v4980_v34 = vmul.f32 %v4924_v11, %v4786_v15  ;;  %5904 = vmatmul.mubr.f32.gmra.mrb[84].mxu0 %v4978_v29 }
 0x3fb   : > { %v4979_v14 = vmul.f32 %v4920_v56, %v4781_v62  ;;  %v5831_v53 = vpop.f32.mrb[88].mxu1 }
 0x3fc   : > { %v4796_v49 = vadd.f32 %v5831_v53, %v7477_v19  ;;  %v4790_v0 = vpop.f32.mrb[89].mxu1 }
 0x3fd   : > { %v4791_v39 = vadd.f32 %v7477_v19, %v4790_v0  ;;  %5906 = vmatprep.mubr.f32.mxu0 %v4979_v14 }
 0x3fe   : > { %v4982_v48 = vmul.f32 %v4932_v18, %v4796_v49  ;;  %5907 = vmatmul.mubr.f32.gmra.mrb[86].mxu0 %v4980_v34 }
 0x3ff   : > { %v4981_v6 = vmul.f32 %v4928_v54, %v4791_v39  ;;  %v5834_v46 = vpop.f32.mrb[90].mxu1 }
 0x400   : > { %v4806_v59 = vadd.f32 %v5834_v46, %v7477_v19  ;;  %v4800_v4 = vpop.f32.mrb[91].mxu1 }
 0x401   : > { %v4801_v22 = vadd.f32 %v7477_v19, %v4800_v4  ;;  %5909 = vmatprep.mubr.f32.mxu0 %v4981_v6 }
 0x402   : > { %v4984_v1 = vmul.f32 %v4940_v9, %v4806_v59  ;;  %5910 = vmatmul.mubr.f32.gmra.mrb[88].mxu0 %v4982_v48 }
 0x403   : > { %v4983_v50 = vmul.f32 %v4936_v12, %v4801_v22  ;;  %v5837_v20 = vpop.f32.mrb[92].mxu1 }
 0x404   : > { %v4816_v45 = vadd.f32 %v5837_v20, %v7477_v19  ;;  %v4810_v28 = vpop.f32.mrb[93].mxu1 }
 0x405   : > { %v4811_v5 = vadd.f32 %v7477_v19, %v4810_v28  ;;  %5912 = vmatprep.mubr.f32.mxu0 %v4983_v50 }
 0x406   : > { %v4986_v3 = vmul.f32 %v4948_v52, %v4816_v45  ;;  %5913 = vmatmul.mubr.f32.gmra.mrb[90].mxu0 %v4984_v1 }
 0x407   : > { %v4985_v42 = vmul.f32 %v4944_v63, %v4811_v5  ;;  %v5840_v31 = vpop.f32.mrb[94].mxu1 }
 0x408   : > { %v4826_v8 = vadd.f32 %v5840_v31, %v7477_v19  ;;  %v4820_v25 = vpop.f32.mrb[95].mxu1 }
 0x409   : > { %v4821_v44 = vadd.f32 %v7477_v19, %v4820_v25  ;;  %5915 = vmatprep.mubr.f32.mxu0 %v4985_v42 }
 0x40a   : > { %v4988_v7 = vmul.f32 %v4956_v33, %v4826_v8  ;;  %5916 = vmatmul.mubr.f32.gmra.mrb[92].mxu0 %v4986_v3 }
 0x40b   : > { %v4987_v36 = vmul.f32 %v4952_v30, %v4821_v44 }
 0x40d   : > { %5918 = vmatprep.mubr.f32.mxu0 %v4987_v36 }
 0x40e   : > { %5919 = vmatmul.mubr.f32.gmra.mrb[94].mxu0 %v4988_v7 }
 0x4a5   : > { %v5875_v57 = vpop.f32.mrb[64].mxu0 }
 0x4a6   : > { %v5084_v51 = vadd.f32 %v5875_v57, %v7578_v40  ;;  %v5078_v17 = vpop.f32.mrb[65].mxu0 }
 0x4a7   : > { %v5079_v24 = vadd.f32 %v7578_v40, %v5078_v17 }
 0x4a8   : > { %5238 = vst [vmem:[%s7584_s8 + $0x8] sm:$0xff] %v5084_v51 }
 0x4a9   : > { %5237 = vst [vmem:[%s7584_s8] sm:$0xff] %v5079_v24  ;;  %v5878_v60 = vpop.f32.mrb[66].mxu0 }
 0x4aa   : > { %v5094_v19 = vadd.f32 %v5878_v60, %v7578_v40  ;;  %v5088_v37 = vpop.f32.mrb[67].mxu0 }
 0x4ab   : > { %v5089_v21 = vadd.f32 %v7578_v40, %v5088_v37 }
 0x4ac   : > { %5240 = vst [vmem:[%s7584_s8 + $0x18] sm:$0xff] %v5094_v19 }
 0x4ad   : > { %5239 = vst [vmem:[%s7584_s8 + $0x10] sm:$0xff] %v5089_v21  ;;  %v5881_v26 = vpop.f32.mrb[68].mxu0 }
 0x4ae   : > { %v5104_v2 = vadd.f32 %v5881_v26, %v7578_v40  ;;  %v5098_v41 = vpop.f32.mrb[69].mxu0 }
 0x4af   : > { %v5099_v32 = vadd.f32 %v7578_v40, %v5098_v41 }
 0x4b0   : > { %5242 = vst [vmem:[%s7584_s8 + $0x28] sm:$0xff] %v5104_v2 }
 0x4b1   : > { %5241 = vst [vmem:[%s7584_s8 + $0x20] sm:$0xff] %v5099_v32  ;;  %v5884_v58 = vpop.f32.mrb[70].mxu0 }
 0x4b2   : > { %v5114_v61 = vadd.f32 %v5884_v58, %v7578_v40  ;;  %v5108_v23 = vpop.f32.mrb[71].mxu0 }
 0x4b3   : > { %v5109_v13 = vadd.f32 %v7578_v40, %v5108_v23 }
 0x4b4   : > { %5244 = vst [vmem:[%s7584_s8 + $0x38] sm:$0xff] %v5114_v61 }
 0x4b5   : > { %5243 = vst [vmem:[%s7584_s8 + $0x30] sm:$0xff] %v5109_v13  ;;  %v5887_v35 = vpop.f32.mrb[72].mxu0 }
 0x4b6   : > { %v5124_v55 = vadd.f32 %v5887_v35, %v7578_v40  ;;  %v5118_v47 = vpop.f32.mrb[73].mxu0 }
 0x4b7   : > { %v5119_v38 = vadd.f32 %v7578_v40, %v5118_v47 }
 0x4b8   : > { %5246 = vst [vmem:[%s7584_s8 + $0x48] sm:$0xff] %v5124_v55 }
 0x4b9   : > { %5245 = vst [vmem:[%s7584_s8 + $0x40] sm:$0xff] %v5119_v38  ;;  %v5890_v16 = vpop.f32.mrb[74].mxu0 }
 0x4ba   : > { %v5134_v29 = vadd.f32 %v5890_v16, %v7578_v40  ;;  %v5128_v10 = vpop.f32.mrb[75].mxu0 }
 0x4bb   : > { %v5129_v43 = vadd.f32 %v7578_v40, %v5128_v10 }
 0x4bc   : > { %5248 = vst [vmem:[%s7584_s8 + $0x58] sm:$0xff] %v5134_v29 }
 0x4bd   : > { %5247 = vst [vmem:[%s7584_s8 + $0x50] sm:$0xff] %v5129_v43  ;;  %v5893_v11 = vpop.f32.mrb[76].mxu0 }
 0x4be   : > { %v5144_v15 = vadd.f32 %v5893_v11, %v7578_v40  ;;  %v5138_v27 = vpop.f32.mrb[77].mxu0 }
 0x4bf   : > { %v5139_v56 = vadd.f32 %v7578_v40, %v5138_v27 }
 0x4c0   : > { %5250 = vst [vmem:[%s7584_s8 + $0x68] sm:$0xff] %v5144_v15 }
 0x4c1   : > { %5249 = vst [vmem:[%s7584_s8 + $0x60] sm:$0xff] %v5139_v56  ;;  %v5896_v62 = vpop.f32.mrb[78].mxu0 }
 0x4c2   : > { %v5154_v34 = vadd.f32 %v5896_v62, %v7578_v40  ;;  %v5148_v14 = vpop.f32.mrb[79].mxu0 }
 0x4c3   : > { %v5149_v53 = vadd.f32 %v7578_v40, %v5148_v14 }
 0x4c4   : > { %5252 = vst [vmem:[%s7584_s8 + $0x78] sm:$0xff] %v5154_v34 }
 0x4c5   : > { %5251 = vst [vmem:[%s7584_s8 + $0x70] sm:$0xff] %v5149_v53  ;;  %v5899_v18 = vpop.f32.mrb[80].mxu0 }
 0x4c6   : > { %v5164_v49 = vadd.f32 %v5899_v18, %v7578_v40  ;;  %v5158_v0 = vpop.f32.mrb[81].mxu0 }
 0x4c7   : > { %v5159_v54 = vadd.f32 %v7578_v40, %v5158_v0 }
 0x4c8   : > { %5254 = vst [vmem:[%s7584_s8 + $0x88] sm:$0xff] %v5164_v49 }
 0x4c9   : > { %5253 = vst [vmem:[%s7584_s8 + $0x80] sm:$0xff] %v5159_v54  ;;  %v5902_v39 = vpop.f32.mrb[82].mxu0 }
 0x4ca   : > { %v5174_v48 = vadd.f32 %v5902_v39, %v7578_v40  ;;  %v5168_v6 = vpop.f32.mrb[83].mxu0 }
 0x4cb   : > { %v5169_v46 = vadd.f32 %v7578_v40, %v5168_v6 }
 0x4cc   : > { %5256 = vst [vmem:[%s7584_s8 + $0x98] sm:$0xff] %v5174_v48 }
 0x4cd   : > { %5255 = vst [vmem:[%s7584_s8 + $0x90] sm:$0xff] %v5169_v46  ;;  %v5905_v9 = vpop.f32.mrb[84].mxu0 }
 0x4ce   : > { %v5184_v59 = vadd.f32 %v5905_v9, %v7578_v40  ;;  %v5178_v4 = vpop.f32.mrb[85].mxu0 }
 0x4cf   : > { %v5179_v12 = vadd.f32 %v7578_v40, %v5178_v4 }
 0x4d0   : > { %5258 = vst [vmem:[%s7584_s8 + $0xa8] sm:$0xff] %v5184_v59 }
 0x4d1   : > { %5257 = vst [vmem:[%s7584_s8 + $0xa0] sm:$0xff] %v5179_v12  ;;  %v5908_v22 = vpop.f32.mrb[86].mxu0 }
 0x4d2   : > { %v5194_v1 = vadd.f32 %v5908_v22, %v7578_v40  ;;  %v5188_v50 = vpop.f32.mrb[87].mxu0 }
 0x4d3   : > { %v5189_v20 = vadd.f32 %v7578_v40, %v5188_v50 }
 0x4d4   : > { %5260 = vst [vmem:[%s7584_s8 + $0xb8] sm:$0xff] %v5194_v1 }
 0x4d5   : > { %5259 = vst [vmem:[%s7584_s8 + $0xb0] sm:$0xff] %v5189_v20  ;;  %v5911_v52 = vpop.f32.mrb[88].mxu0 }
 0x4d6   : > { %v5204_v45 = vadd.f32 %v5911_v52, %v7578_v40  ;;  %v5198_v28 = vpop.f32.mrb[89].mxu0 }
 0x4d7   : > { %v5199_v63 = vadd.f32 %v7578_v40, %v5198_v28 }
 0x4d8   : > { %5262 = vst [vmem:[%s7584_s8 + $0xc8] sm:$0xff] %v5204_v45 }
 0x4d9   : > { %5261 = vst [vmem:[%s7584_s8 + $0xc0] sm:$0xff] %v5199_v63  ;;  %v5914_v5 = vpop.f32.mrb[90].mxu0 }
 0x4da   : > { %v5214_v3 = vadd.f32 %v5914_v5, %v7578_v40  ;;  %v5208_v42 = vpop.f32.mrb[91].mxu0 }
 0x4db   : > { %v5209_v31 = vadd.f32 %v7578_v40, %v5208_v42 }
 0x4dc   : > { %5264 = vst [vmem:[%s7584_s8 + $0xd8] sm:$0xff] %v5214_v3 }
 0x4dd   : > { %5263 = vst [vmem:[%s7584_s8 + $0xd0] sm:$0xff] %v5209_v31  ;;  %v5917_v33 = vpop.f32.mrb[92].mxu0 }
 0x4de   : > { %v5224_v8 = vadd.f32 %v5917_v33, %v7578_v40  ;;  %v5218_v25 = vpop.f32.mrb[93].mxu0 }
 0x4df   : > { %v5219_v30 = vadd.f32 %v7578_v40, %v5218_v25 }
 0x4e0   : > { %5266 = vst [vmem:[%s7584_s8 + $0xe8] sm:$0xff] %v5224_v8 }
 0x4e1   : > { %5265 = vst [vmem:[%s7584_s8 + $0xe0] sm:$0xff] %v5219_v30  ;;  %v5920_v44 = vpop.f32.mrb[94].mxu0 }
 0x4e2   : > { %v5234_v7 = vadd.f32 %v5920_v44, %v7578_v40  ;;  %v5228_v36 = vpop.f32.mrb[95].mxu0 }
 0x4e3   : > { %v5229_v57 = vadd.f32 %v7578_v40, %v5228_v36 }
 0x4e4   : > { %5268 = vst [vmem:[%s7584_s8 + $0xf8] sm:$0xff] %v5234_v7 }
 0x4e5   : > { %5267 = vst [vmem:[%s7584_s8 + $0xf0] sm:$0xff] %v5229_v57 }
 0x4e6   : > { %6389 = shalt.err (!%p6386_p4)
}
 0x4e7   : > { %s6390_s9 = scalar_lea.hbm %s7650_s19, 4096  ;;  %s6394_s17 = scalar_lea.hbm %s7706_s7, 8192 }
 0x4e8   : > { %p6391_p9 = scmp.ne.s32.totalorder %s7650_s19, %s6390_s9  ;;  %p6395_p8 = scmp.lt.u32.totalorder %s7650_s19, %s7706_s7 }
 0x4e9   : > { %p6396_p13 = scmp.lt.u32.totalorder %s6394_s17, %s6390_s9  ;;  %p6398_p10 = scmp.lt.u32.totalorder %s6390_s9, %s7650_s19 }
 0x4ea   : > { %p6392_p0 = pnand %p6391_p9, %p6653_p5 }
 0x4eb   : > { %p6397_p6 = por %p6396_p13, %p6395_p8 }
 0x4ec   : > { %p6393_p11 = pneg %p6392_p0 }
 0x4ed   : > { %p6399_p3 = por %p6398_p10, %p6397_p6 }
 0x4ef   : > { %p6400_p7 = pnand %p6399_p3, %p6393_p11 }
 0x4f1   : > { %6403 = shalt.err (!%p6400_p7)
}
 0x4f2   : > { %s6463_s23 = smov 128   ;;  %s6464_s11 = smov 8  }
 0x4f3   : > { %6031 = dma.vmem_to_hbm [thread:$0]  (%p6653_p5), %s7652_s16, 4096, %s7650_s19, %s5270_s28, %s6463_s23, %s6463_s23, %s6464_s11  }
 0x4f4 PF: > { %s7751_s12 = sld [smem:[#allocation15_spill]]  ;;  %s5298_s21 = sand.u32 1, %s6438_s24  }
 0x4f5   : > { %p7753_p2 = scmp.ge.s32.totalorder %s6450_s27, 2  ;;  %s5299_s22 = scalar_lea.sflag [#allocation4], %s5298_s21 }
 0x4fa   : > { %p7752_p12 = scmp.ne.s32.totalorder %s7751_s12, 0 }
 0x4fc   : > { %p6048_p1 = pnand %p7753_p2, %p7752_p12 }
 0x4fe   : > { %6433 = dma.done.wait (!%p6048_p1), %s5299_s22, 4096  }
 0x4ff   : > { %6435 = vsyncadd (!%p6048_p1), %s5299_s22, 4294963200  ;;  %p22_p4 = scmp.ge.s32.totalorder %s6618_s18, 4   ;;  %s7754_s24 = smov %s6442_s25 }
 0x500   : > { %s7755_s25 = smov %s6446_s26  ;;  %s7756_s26 = smov %s6649_s13 }
 0x501   : > { %s7757_s27 = smov %s6618_s18  ;;  %24 = sbr.rel (!%p22_p4) target bundleno = 9 (0x9), region = 105 }
 0x508   :  { %5304 = vsyncpa [#allocation3], 1 }
 0x509   :  { %5306 = vsyncpa [#allocation3 + $0x1], 1 }
 0x50a   :  { %5307 = vsyncpa [#allocation6], 1 }
 0x50b   :  { %5308 = vsyncpa [#allocation9], 1 }
 0x50c   :  { %5309 = vsyncpa [#allocation4], 1 }
 0x50d   :  { %5311 = vsyncpa [#allocation4 + $0x1], 1 }

</bundles_post_ra>
